<compile_context>
chip_gen: v7x
topology: tpu7x:2x2x1
jax: 0.10.0
libtpu: 0.0.40
codegen_flags: <defaults>
</compile_context>

<pallas_src>
import jax
import jax.numpy as jnp
from jax.experimental import pallas as pl
from jax.experimental.pallas import tpu as pltpu


def _cdiv(a, b):
    return -(-a // b)


def _round_up(a, b):
    return _cdiv(a, b) * b


def _vmem_block_batch_cap(d, k, hw, sub_batch, vmem_budget_bytes=24 << 20,
                          hard_cap=256, itemsize=4):
    """Largest per-step sample count that keeps the pipeline inside VMEM.

    Budgeted against the tightest generation (v7x: 64 MiB physical / 32 MiB
    scoped per TensorCore; v5e/v6e have 128 MiB physical).  Per-sample cost:
    double-buffered v block, up block, out block.  A fixed allowance covers the
    in-kernel (SB, K, HW) temporaries, which do NOT scale with Bt thanks to the
    inner sub-batch loop.
    """
    per_sample = itemsize * (2 * d * hw + 2 * k + 2 * d)
    temporaries = itemsize * 8 * sub_batch * k * hw
    cap = max(sub_batch, (vmem_budget_bytes - temporaries) // per_sample)
    cap = min(int(cap), hard_cap)
    return max(sub_batch, (cap // sub_batch) * sub_batch)


def _choose_tiling(n, bt_cap, sub_batch, min_grid_steps=2):
    """Pick (Bt, grid) with grid*Bt >= n, Bt % sub_batch == 0, grid >= 2."""
    grid = max(min_grid_steps, _cdiv(n, bt_cap))
    bt = min(_round_up(_cdiv(n, grid), sub_batch), bt_cap)
    grid = max(min_grid_steps, _cdiv(n, bt))
    return bt, grid


def _make_attention_kernel(sub_batch, compute_dtype):
    SB = sub_batch

    def attention_kernel(v_ref, up_ref, wv_ref, wp_ref, out_ref):
        # v_ref  : (Bt, D, HW) channels on sublanes, pixels on lanes (native NCHW)
        # up_ref : (Bt, K, 1)  precomputed Wu@u + bu + bv (broadcasts over pixels)
        # wv_ref : (D, K, 1)   1x1-conv weight, one (K,1) column per input channel
        # wp_ref : (K, 1)      1x1-conv (K->1) weight (its bias is dropped:
        #                      softmax is shift-invariant)
        # out_ref: (n_inner, SB, D)
        bt, d, hw = v_ref.shape
        n_inner = bt // SB

        # Tiny resident weights: load once per grid step, reuse in the loop.
        wv = wv_ref[...].astype(compute_dtype)        # (D, K, 1)
        wp = wp_ref[...].astype(compute_dtype)        # (K, 1)

        # Big DMA tile (Bt), small compute tile (SB).
        @pl.loop(0, n_inner)
        def _(i):
            off = pl.multiple_of(i * SB, SB)
            v_sub = v_ref[pl.ds(off, SB), :, :]                          # (SB, D, HW)
            up_sub = up_ref[pl.ds(off, SB), :, :].astype(compute_dtype)  # (SB, K, 1)
            v_c = v_sub.astype(compute_dtype)

            # D->K 1x1 conv as a VPU contraction unrolled over D (D is tiny; an
            # MXU matmul of depth D would idle >96% of the array per sample).
            acc = wv[0][None] * v_c[:, 0:1, :]                           # (SB, K, HW)
            for dd in range(1, d):
                acc = acc + wv[dd][None] * v_c[:, dd:dd + 1, :]

            h = jnp.tanh(acc + up_sub)                                   # (SB, K, HW)

            # K->1 "conv": VPU multiply + sublane reduce over K (no 1-wide matmul).
            s = jnp.sum((wp[None] * h).astype(jnp.float32), axis=1)      # (SB, HW)

            # Softmax over pixels (lane axis), with deferred normalization.
            s = s - jnp.max(s, axis=-1, keepdims=True)
            e = jnp.exp(s)                                               # (SB, HW)
            denom = jnp.sum(e, axis=-1, keepdims=True)                   # (SB, 1)

            # Weighted sum of v with un-normalized weights, then a single
            # 1/denom scale per sample (D multiplies instead of HW divides).
            # approx=True would push the reciprocal onto the EUP approx path;
            # kept exact here to stay well within 1e-3 of the f32 reference.
            wsum = jnp.sum(e[:, None, :] * v_sub.astype(jnp.float32),
                           axis=-1)                                      # (SB, D)
            inv = pl.reciprocal(denom, approx=False)                     # (SB, 1)
            out_ref[i] = (wsum * inv).astype(out_ref.dtype)

    return attention_kernel


def attention_layer_forward(v, u, params, *, compute_dtype=jnp.float32,
                            sub_batch=8, block_batch_cap=None):
    """v: (N, D, H, W), u: (N, D) -> (N, D).

    compute_dtype=jnp.bfloat16 is the recommended setting for the tanh/exp
    chain on v6e/v7x when tolerance allows; keep float32 on v5e (no bf16
    VPU/EUP) and whenever bit-tight agreement with an f32 reference is needed.
    """
    N, D, H, W = v.shape
    K = params["wv_w"].shape[1]
    HW = H * W

    if block_batch_cap is None:
        block_batch_cap = _vmem_block_batch_cap(D, K, HW, sub_batch)
    Bt, G = _choose_tiling(N, block_batch_cap, sub_batch)
    Np = Bt * G
    n_inner = Bt // sub_batch

    # NCHW is already contiguous as (N, D, H*W): free reshape, no relayout.
    v_r = v.reshape(N, D, HW)

    # Hoist the per-sample Linear to one batched XLA matmul; fold in both the
    # Linear bias and the Wv conv bias (both broadcast over pixels).
    u_all = u @ params["wu_w"] + params["wu_b"] + params["wv_b"]     # (N, K)

    # Zero-pad the batch to grid*Bt.  Padded rows are harmless: v=0 plus a
    # constant per-pixel score gives a uniform softmax over a zero feature
    # map -> exact zero output (no NaN/Inf).
    if Np != N:
        v_r = jnp.pad(v_r, ((0, Np - N), (0, 0), (0, 0)))
        u_all = jnp.pad(u_all, ((0, Np - N), (0, 0)))
    u_all = u_all.reshape(Np, K, 1)

    wv = params["wv_w"].reshape(D, K, 1)   # column d = K-vector for input channel d
    wp = params["wp_w"]                    # (K, 1)

    kernel = _make_attention_kernel(sub_batch, compute_dtype)

    out = pl.pallas_call(
        kernel,
        out_shape=jax.ShapeDtypeStruct((Np // sub_batch, sub_batch, D), v.dtype),
        grid_spec=pltpu.PrefetchScalarGridSpec(
            num_scalar_prefetch=0,
            grid=(G,),
            in_specs=[
                pl.BlockSpec((Bt, D, HW), lambda n: (n, 0, 0)),   # v (pipelined)
                pl.BlockSpec((Bt, K, 1), lambda n: (n, 0, 0)),    # u_proj (+biases)
                pl.BlockSpec((D, K, 1), lambda n: (0, 0, 0)),     # Wv (resident)
                pl.BlockSpec((K, 1), lambda n: (0, 0)),           # Wp (resident)
            ],
            out_specs=pl.BlockSpec((n_inner, sub_batch, D), lambda n: (n, 0, 0)),
        ),
        compiler_params=pltpu.CompilerParams(
            dimension_semantics=("parallel",),   # >=2 grid steps -> both v7x TCs
            vmem_limit_bytes=32 * 1024 * 1024),
    )(v_r, u_all, wv, wp)

    return out.reshape(Np, D)[:N]


def init_params(key, input_dim, hidden_dim):
    """Deterministic synthetic parameters (shapes follow the PyTorch module)."""
    ks = jax.random.split(key, 6)
    D, K = input_dim, hidden_dim
    scale_v = 1.0 / jnp.sqrt(D)
    scale_p = 1.0 / jnp.sqrt(K)
    return {
        # Conv2d(D, K, 1) weight (K, D, 1, 1) stored transposed as (D, K)
        "wv_w": (jax.random.uniform(ks[0], (D, K), jnp.float32, -1, 1) * scale_v),
        "wv_b": (jax.random.uniform(ks[1], (1, K), jnp.float32, -1, 1) * scale_v),
        # Linear(D, K) weight (K, D) stored transposed as (D, K)
        "wu_w": (jax.random.uniform(ks[2], (D, K), jnp.float32, -1, 1) * scale_v),
        "wu_b": (jax.random.uniform(ks[3], (1, K), jnp.float32, -1, 1) * scale_v),
        # Conv2d(K, 1, 1) weight (1, K, 1, 1) stored transposed as (K, 1)
        "wp_w": (jax.random.uniform(ks[4], (K, 1), jnp.float32, -1, 1) * scale_p),
        "wp_b": (jax.random.uniform(ks[5], (1, 1), jnp.float32, -1, 1) * scale_p),
    }


def reference_forward(v, u, params):
    """Pure-JAX reference mirroring the PyTorch forward."""
    N, D, H, W = v.shape
    v_flat = jnp.transpose(v, (0, 2, 3, 1)).reshape(N, H * W, D)   # (N, HW, D)
    v_proj = v_flat @ params["wv_w"] + params["wv_b"]              # (N, HW, K)
    u_proj = u @ params["wu_w"] + params["wu_b"]                   # (N, K)
    h = jnp.tanh(v_proj + u_proj[:, None, :])
    s = (h @ params["wp_w"] + params["wp_b"])[..., 0]              # (N, HW)
    p = jax.nn.softmax(s, axis=-1)                                 # (N, HW)
    return jnp.einsum("np,npd->nd", p, v_flat)                     # (N, D)


if __name__ == "__main__":
    N, D, H, W = 2, 4, 16, 16
    K = 32

    key = jax.random.PRNGKey(0)
    k_v, k_u, k_p = jax.random.split(key, 3)

    v = jax.random.normal(k_v, (N, D, H, W), jnp.float32)
    u = jax.random.normal(k_u, (N, D), jnp.float32)
    params = init_params(k_p, D, K)

    out = attention_layer_forward(v, u, params)   # f32 compute (safe on v5e/v6e/v7x)
    out = jax.block_until_ready(out)

    ref = reference_forward(v, u, params)
    assert out.shape == (N, D)
    assert jnp.allclose(out, ref, rtol=1e-3, atol=1e-3), "mismatch vs JAX reference"

    # TODO(synk): the PyTorch module also caches self.attention_maps for getMap();
    # only the returned v_tilde is produced here.
    print("KERNEL_OK")
</pallas_src>

<mosaic_0001>
module attributes {stable_mosaic.version = 11 : i64} {
  func.func @attention_kernel(%arg0: i32, %arg1: memref<8x4x256xf32, #tpu.memory_space<vmem>>, %arg2: memref<8x32x1xf32, #tpu.memory_space<vmem>>, %arg3: memref<4x32x1xf32, #tpu.memory_space<vmem>>, %arg4: memref<32x1xf32, #tpu.memory_space<vmem>>, %arg5: memref<1x8x4xf32, #tpu.memory_space<vmem>>) attributes {dimension_semantics = [#tpu.dimension_semantics<parallel>], iteration_bounds = array<i64: 2>, scalar_prefetch = 0 : i64, scratch_operands = 0 : i64, tpu.core_type = #tpu.core_type<tc>, window_params = [{transform_indices = @transform_0, window_bounds = array<i64: 8, 4, 256>}, {transform_indices = @transform_1, window_bounds = array<i64: 8, 32, 1>}, {pipeline_mode = #tpu.pipeline_mode<synchronous>, transform_indices = @transform_2, window_bounds = array<i64: 4, 32, 1>}, {pipeline_mode = #tpu.pipeline_mode<synchronous>, transform_indices = @transform_3, window_bounds = array<i64: 32, 1>}, {transform_indices = @transform_4, window_bounds = array<i64: 1, 8, 4>}]} {
    %c0 = arith.constant 0 : index
    %c0_0 = arith.constant 0 : index
    %c0_1 = arith.constant 0 : index
    %0 = vector.load %arg3[%c0, %c0_0, %c0_1] : memref<4x32x1xf32, #tpu.memory_space<vmem>>, vector<4x32x1xf32>
    %c0_2 = arith.constant 0 : index
    %c0_3 = arith.constant 0 : index
    %1 = vector.load %arg4[%c0_2, %c0_3] : memref<32x1xf32, #tpu.memory_space<vmem>>, vector<32x1xf32>
    %c0_i32 = arith.constant 0 : i32
    %c1_i32 = arith.constant 1 : i32
    %2 = arith.muli %c0_i32, %c1_i32 : i32
    %c0_i32_4 = arith.constant 0 : i32
    %3 = arith.addi %c0_i32_4, %2 : i32
    %c8_i32 = arith.constant 8 : i32
    %4 = arith.muli %3, %c8_i32 : i32
    %5 = tpu.assume_multiple %4, 8 : i32
    %6 = arith.index_cast %5 : i32 to index
    %c0_5 = arith.constant 0 : index
    %c0_6 = arith.constant 0 : index
    %7 = vector.load %arg1[%6, %c0_5, %c0_6] : memref<8x4x256xf32, #tpu.memory_space<vmem>>, vector<8x4x256xf32>
    %8 = arith.index_cast %5 : i32 to index
    %c0_7 = arith.constant 0 : index
    %c0_8 = arith.constant 0 : index
    %9 = vector.load %arg2[%8, %c0_7, %c0_8] : memref<8x32x1xf32, #tpu.memory_space<vmem>>, vector<8x32x1xf32>
    %10 = vector.extract_strided_slice %0 {offsets = [0, 0, 0], sizes = [1, 32, 1], strides = [1, 1, 1]} : vector<4x32x1xf32> to vector<1x32x1xf32>
    %11 = vector.shape_cast %10 : vector<1x32x1xf32> to vector<32x1xf32>
    %12 = vector.shape_cast %11 : vector<32x1xf32> to vector<1x32x1xf32>
    %13 = vector.extract_strided_slice %7 {offsets = [0, 0, 0], sizes = [8, 1, 256], strides = [1, 1, 1]} : vector<8x4x256xf32> to vector<8x1x256xf32>
    %14 = vector.broadcast %12 : vector<1x32x1xf32> to vector<8x32x256xf32>
    %15 = vector.broadcast %13 : vector<8x1x256xf32> to vector<8x32x256xf32>
    %16 = arith.mulf %14, %15 : vector<8x32x256xf32>
    %17 = vector.extract_strided_slice %0 {offsets = [1, 0, 0], sizes = [1, 32, 1], strides = [1, 1, 1]} : vector<4x32x1xf32> to vector<1x32x1xf32>
    %18 = vector.shape_cast %17 : vector<1x32x1xf32> to vector<32x1xf32>
    %19 = vector.shape_cast %18 : vector<32x1xf32> to vector<1x32x1xf32>
    %20 = vector.extract_strided_slice %7 {offsets = [0, 1, 0], sizes = [8, 1, 256], strides = [1, 1, 1]} : vector<8x4x256xf32> to vector<8x1x256xf32>
    %21 = vector.broadcast %19 : vector<1x32x1xf32> to vector<8x32x256xf32>
    %22 = vector.broadcast %20 : vector<8x1x256xf32> to vector<8x32x256xf32>
    %23 = arith.mulf %21, %22 : vector<8x32x256xf32>
    %24 = arith.addf %16, %23 : vector<8x32x256xf32>
    %25 = vector.extract_strided_slice %0 {offsets = [2, 0, 0], sizes = [1, 32, 1], strides = [1, 1, 1]} : vector<4x32x1xf32> to vector<1x32x1xf32>
    %26 = vector.shape_cast %25 : vector<1x32x1xf32> to vector<32x1xf32>
    %27 = vector.shape_cast %26 : vector<32x1xf32> to vector<1x32x1xf32>
    %28 = vector.extract_strided_slice %7 {offsets = [0, 2, 0], sizes = [8, 1, 256], strides = [1, 1, 1]} : vector<8x4x256xf32> to vector<8x1x256xf32>
    %29 = vector.broadcast %27 : vector<1x32x1xf32> to vector<8x32x256xf32>
    %30 = vector.broadcast %28 : vector<8x1x256xf32> to vector<8x32x256xf32>
    %31 = arith.mulf %29, %30 : vector<8x32x256xf32>
    %32 = arith.addf %24, %31 : vector<8x32x256xf32>
    %33 = vector.extract_strided_slice %0 {offsets = [3, 0, 0], sizes = [1, 32, 1], strides = [1, 1, 1]} : vector<4x32x1xf32> to vector<1x32x1xf32>
    %34 = vector.shape_cast %33 : vector<1x32x1xf32> to vector<32x1xf32>
    %35 = vector.shape_cast %34 : vector<32x1xf32> to vector<1x32x1xf32>
    %36 = vector.extract_strided_slice %7 {offsets = [0, 3, 0], sizes = [8, 1, 256], strides = [1, 1, 1]} : vector<8x4x256xf32> to vector<8x1x256xf32>
    %37 = vector.broadcast %35 : vector<1x32x1xf32> to vector<8x32x256xf32>
    %38 = vector.broadcast %36 : vector<8x1x256xf32> to vector<8x32x256xf32>
    %39 = arith.mulf %37, %38 : vector<8x32x256xf32>
    %40 = arith.addf %32, %39 : vector<8x32x256xf32>
    %41 = vector.broadcast %9 : vector<8x32x1xf32> to vector<8x32x256xf32>
    %42 = arith.addf %40, %41 : vector<8x32x256xf32>
    %43 = math.tanh %42 : vector<8x32x256xf32>
    %44 = vector.shape_cast %1 : vector<32x1xf32> to vector<1x32x1xf32>
    %45 = vector.broadcast %44 : vector<1x32x1xf32> to vector<8x32x256xf32>
    %46 = arith.mulf %45, %43 : vector<8x32x256xf32>
    %cst = arith.constant dense<0.000000e+00> : vector<8x256xf32>
    %47 = vector.multi_reduction <add>, %46, %cst [1] : vector<8x32x256xf32> to vector<8x256xf32>
    %cst_9 = arith.constant dense<0xFF800000> : vector<8xf32>
    %48 = vector.multi_reduction <maximumf>, %47, %cst_9 [1] : vector<8x256xf32> to vector<8xf32>
    %49 = vector.shape_cast %48 : vector<8xf32> to vector<8x1xf32>
    %50 = vector.broadcast %49 : vector<8x1xf32> to vector<8x256xf32>
    %51 = arith.subf %47, %50 : vector<8x256xf32>
    %52 = math.exp %51 : vector<8x256xf32>
    %cst_10 = arith.constant dense<0.000000e+00> : vector<8xf32>
    %53 = vector.multi_reduction <add>, %52, %cst_10 [1] : vector<8x256xf32> to vector<8xf32>
    %54 = vector.shape_cast %53 : vector<8xf32> to vector<8x1xf32>
    %55 = vector.shape_cast %52 : vector<8x256xf32> to vector<8x1x256xf32>
    %56 = vector.broadcast %55 : vector<8x1x256xf32> to vector<8x4x256xf32>
    %57 = arith.mulf %56, %7 : vector<8x4x256xf32>
    %cst_11 = arith.constant dense<0.000000e+00> : vector<8x4xf32>
    %58 = vector.multi_reduction <add>, %57, %cst_11 [2] : vector<8x4x256xf32> to vector<8x4xf32>
    %59 = tpu.reciprocal %54 : vector<8x1xf32> -> vector<8x1xf32>
    %60 = vector.broadcast %59 : vector<8x1xf32> to vector<8x4xf32>
    %61 = arith.mulf %58, %60 : vector<8x4xf32>
    %62 = arith.index_cast %3 : i32 to index
    %c0_12 = arith.constant 0 : index
    %c0_13 = arith.constant 0 : index
    %63 = vector.load %arg5[%62, %c0_12, %c0_13] : memref<1x8x4xf32, #tpu.memory_space<vmem>>, vector<1x8x4xf32>
    %64 = vector.shape_cast %63 : vector<1x8x4xf32> to vector<8x4xf32>
    %65 = vector.shape_cast %61 : vector<8x4xf32> to vector<1x8x4xf32>
    tpu.vector_store %arg5[%62, %c0_12, %c0_13], %65 {strides = array<i32>} : memref<1x8x4xf32, #tpu.memory_space<vmem>>, vector<1x8x4xf32>,
    %c1_i32_14 = arith.constant 1 : i32
    return
  }
  func.func @transform_0(%arg0: i32) -> (i32, i32, i32) {
    %c0_i32 = arith.constant 0 : i32
    %c0_i32_0 = arith.constant 0 : i32
    %c0_i32_1 = arith.constant 0 : i32
    return %arg0, %c0_i32, %c0_i32_0 : i32, i32, i32
  }
  func.func @transform_1(%arg0: i32) -> (i32, i32, i32) {
    %c0_i32 = arith.constant 0 : i32
    %c0_i32_0 = arith.constant 0 : i32
    %c0_i32_1 = arith.constant 0 : i32
    return %arg0, %c0_i32, %c0_i32_0 : i32, i32, i32
  }
  func.func @transform_2(%arg0: i32) -> (i32, i32, i32) {
    %c0_i32 = arith.constant 0 : i32
    %c0_i32_0 = arith.constant 0 : i32
    %c0_i32_1 = arith.constant 0 : i32
    %c0_i32_2 = arith.constant 0 : i32
    return %c0_i32, %c0_i32_0, %c0_i32_1 : i32, i32, i32
  }
  func.func @transform_3(%arg0: i32) -> (i32, i32) {
    %c0_i32 = arith.constant 0 : i32
    %c0_i32_0 = arith.constant 0 : i32
    %c0_i32_1 = arith.constant 0 : i32
    return %c0_i32, %c0_i32_0 : i32, i32
  }
  func.func @transform_4(%arg0: i32) -> (i32, i32, i32) {
    %c0_i32 = arith.constant 0 : i32
    %c0_i32_0 = arith.constant 0 : i32
    %c0_i32_1 = arith.constant 0 : i32
    return %arg0, %c0_i32, %c0_i32_0 : i32, i32, i32
  }
}

</mosaic_0001>

<bundles_post_ra>
// kernel: tpu_custom_call.1
= control target key start
LH: loop header
LB: loop body
LE: loop exit
PB: predicated region body
PF: predicated region fallthrough
CT: control target
= control target key end

     0   :  { %s2641_s15 = smov 0   ;;  %s4181_s0 = inlined_call_operand.vmem [shape: f32[16,4,256], index: 0, kind: input, shape index: {}]   ;;  %s4182_s1 = inlined_call_operand.vmem [shape: f32[16,32,1], index: 1, kind: input, shape index: {}]   ;;  %s4183_s2 = inlined_call_operand.vmem [shape: f32[4,32,1], index: 2, kind: input, shape index: {}]   ;;  %s4184_s3 = inlined_call_operand.vmem [shape: f32[32,1], index: 3, kind: input, shape index: {}]   ;;  %s4185_s4 = inlined_call_operand.vmem [shape: f32[2,8,4], index: 4, kind: output, shape index: {}]  }
   0x1 LB: > { %s2647_s16 = sadd.s32 4294967295, %s2613_s15   ;;  %p2406_p0 = scmp.ge.s32.totalorder %s2613_s15, 1  ;;  %s2613_s15 = sphi %s2641_s15, %s14_s15  }
   0x2   : > { %p176_p1 = scmp.lt.s32.totalorder %s2613_s15, 3 }
   0x4   : > { %p177_p2 = pnand %p2406_p0, %p176_p1 }
   0x6   : > { %180 = sbr.rel (%p177_p2) target bundleno = 834 (0x342), region = 36 }
   0xd   : > { %v230_v0 = vld [vmem:[%s4183_s2 + $0x20] sm:$0xff]  ;;  %v2615_v2 = vmov 0   ;;  %v231_v3 = vld [vmem:[%s4183_s2 + $0x28] sm:$0xff]  ;;  %v232_v5 = vld [vmem:[%s4183_s2 + $0x30] sm:$0xff]  ;;  %s2407_s7 = sshll.u32 %s2647_s16, 3  ;;  %v4186_v45 = vlaneseq  ;;  %vm1935_vm0 = vcmask 1041409  }
   0xe   : > { %v226_v1 = vld [vmem:[%s4183_s2] sm:$0xff]  ;;  %2428 = vset.pattern.permute.xlu1 %v2615_v2  ;;  %2427 = vset.pattern.permute.xlu0 %v2615_v2  ;;  %v227_v4 = vld [vmem:[%s4183_s2 + $0x8] sm:$0xff]  ;;  %v228_v6 = vld [vmem:[%s4183_s2 + $0x10] sm:$0xff]  ;;  %p209_p3 = scmp.lt.s32.totalorder %s2407_s7, 15  ;;  %vm1937_vm1 = vcmask 1042434   ;;  %vm1939_vm2 = vcmask 1043459  }
   0xf   : > { %529 = vperm.xlu1 %2428, %v230_v0   ;;  %293 = vperm.xlu0 %2427, %v226_v1   ;;  %v235_v7 = vld [vmem:[%s4183_s2 + $0x48] sm:$0xff]  ;;  %v234_v8 = vld [vmem:[%s4183_s2 + $0x40] sm:$0xff]  ;;  %v233_v9 = vld [vmem:[%s4183_s2 + $0x38] sm:$0xff]  ;;  %v2740_v48 = vshrl.u32 %v4186_v45, 7  ;;  %vm1941_vm3 = vcmask 1044484   ;;  %vm1943_vm4 = vcmask 1045509  }
  0x10   : > { %v229_v10 = vld [vmem:[%s4183_s2 + $0x18] sm:$0xff]  ;;  %v238_v11 = vld [vmem:[%s4183_s2 + $0x60] sm:$0xff]  ;;  %v236_v12 = vld [vmem:[%s4183_s2 + $0x50] sm:$0xff]  ;;  %s4566_s7 = smov (!%p209_p3, %s2407_s7), 15  ;;  %vm1945_vm5 = vcmask 1046534   ;;  %vm1947_vm6 = vcmask 1047559  }
  0x11   : > { %v237_v13 = vld [vmem:[%s4183_s2 + $0x58] sm:$0xff]  ;;  %v239_v14 = vld [vmem:[%s4183_s2 + $0x68] sm:$0xff]  ;;  %s2417_s22 = sshll.u32 %s4566_s7, 5  ;;  %v240_v16 = vld [vmem:[%s4183_s2 + $0x70] sm:$0xff]  ;;  %s2416_s30 = sshll.u32 %s4566_s7, 3  ;;  %4286 = vst [vmem:[#allocation2_spill] sm:$0xff] %v2740_v48 }
  0x12   : > { %v241_v15 = vld [vmem:[%s4183_s2 + $0x78] sm:$0xff]  ;;  %s2706_s29 = scalar_lea.vmem %s4182_s1, %s2417_s22  ;;  %s2745_s8 = scalar_lea.vmem %s4181_s0, %s2416_s30  ;;  %v2750_v51 = vsub.s32 0, %v2740_v48  ;;  %v2754_v53 = vsub.s32 4, %v2740_v48  ;;  %v2757_v54 = vsub.s32 1, %v2740_v48  ;;  %v243_v55 = vld [vmem:[%s4184_s3 + $0x8] sm:$0xff]  ;;  %v242_v56 = vld [vmem:[%s4184_s3] sm:$0xff] }
  0x13   : > { %534 = vperm.xlu1 %2428, %v231_v3   ;;  %298 = vperm.xlu0 %2427, %v227_v4   ;;  %v260_v17 = vld [vmem:[%s2706_s29 + $0x8] sm:$0xff]  ;;  %v259_v18 = vld [vmem:[%s2706_s29] sm:$0xff]  ;;  %v265_v23 = vld [vmem:[%s2706_s29 + $0x30] sm:$0xff]  ;;  %v2766_v57 = vsub.s32 5, %v2740_v48  ;;  %v2769_v58 = vsub.s32 2, %v2740_v48  ;;  %v2772_v59 = vsub.s32 6, %v2740_v48 }
  0x14   : > { %v264_v19 = vld [vmem:[%s2706_s29 + $0x28] sm:$0xff]  ;;  %v263_v20 = vld [vmem:[%s2706_s29 + $0x20] sm:$0xff]  ;;  %v261_v24 = vld [vmem:[%s2706_s29 + $0x10] sm:$0xff]  ;;  %4287 = vst [vmem:[#allocation3_spill] sm:$0xff] %v2750_v51  ;;  %v2775_v60 = vsub.s32 3, %v2740_v48  ;;  %v2778_v61 = vsub.s32 7, %v2740_v48 }
  0x15   : > { %v268_v21 = vld [vmem:[%s2706_s29 + $0x48] sm:$0xff]  ;;  %v267_v22 = vld [vmem:[%s2706_s29 + $0x40] sm:$0xff]  ;;  %v269_v28 = vld [vmem:[%s2706_s29 + $0x50] sm:$0xff]  ;;  %4288 = vst [vmem:[#allocation4_spill] sm:$0xff] %v2754_v53  ;;  %vm2170_vm7 = vcmask 1043456   ;;  %p222_p4 = scmp.lt.s32.totalorder %s2647_s16, 1 }
  0x16   : > { %v272_v25 = vld [vmem:[%s2706_s29 + $0x68] sm:$0xff]  ;;  %v271_v26 = vld [vmem:[%s2706_s29 + $0x60] sm:$0xff]  ;;  %v262_v29 = vld [vmem:[%s2706_s29 + $0x18] sm:$0xff]  ;;  %4289 = vst [vmem:[#allocation5_spill] sm:$0xff] %v2757_v54  ;;  %vm2335_vm8 = vcmask 31744  }
  0x17   : > { %539 = vperm.xlu1 %2428, %v232_v5   ;;  %303 = vperm.xlu0 %2427, %v228_v6   ;;  %v275_v27 = vld [vmem:[%s2706_s29 + $0x80] sm:$0xff]  ;;  %v276_v30 = vld [vmem:[%s2706_s29 + $0x88] sm:$0xff]  ;;  %v273_v31 = vld [vmem:[%s2706_s29 + $0x70] sm:$0xff]  ;;  %4290 = vst [vmem:[#allocation6_spill] sm:$0xff] %v2766_v57  ;;  %s4568_s16 = smov (!%p222_p4, %s2647_s16), 1 }
  0x18   : > { %v266_v32 = vld [vmem:[%s2706_s29 + $0x38] sm:$0xff]  ;;  %v280_v33 = vld [vmem:[%s2706_s29 + $0xa8] sm:$0xff]  ;;  %v279_v34 = vld [vmem:[%s2706_s29 + $0xa0] sm:$0xff]  ;;  %4291 = vst [vmem:[#allocation7_spill] sm:$0xff] %v2769_v58  ;;  %s2413_s18 = sshll.u32 %s4568_s16, 3 }
  0x19   : > { %v277_v35 = vld [vmem:[%s2706_s29 + $0x90] sm:$0xff]  ;;  %v270_v36 = vld [vmem:[%s2706_s29 + $0x58] sm:$0xff]  ;;  %v284_v37 = vld [vmem:[%s2706_s29 + $0xc8] sm:$0xff]  ;;  %4292 = vst [vmem:[#allocation8_spill] sm:$0xff] %v2772_v59  ;;  %s225_s21 = scalar_lea.vmem %s4185_s4, %s2413_s18 }
  0x1a   : > { %v283_v38 = vld [vmem:[%s2706_s29 + $0xc0] sm:$0xff]  ;;  %v281_v39 = vld [vmem:[%s2706_s29 + $0xb0] sm:$0xff]  ;;  %v274_v40 = vld [vmem:[%s2706_s29 + $0x78] sm:$0xff]  ;;  %4293 = vst [vmem:[#allocation9_spill] sm:$0xff] %v2775_v60 }
  0x1b   : > { %826 = vperm.xlu1 %2428, %v235_v7   ;;  %821 = vperm.xlu0 %2427, %v234_v8   ;;  %v288_v41 = vld [vmem:[%s2706_s29 + $0xe8] sm:$0xff]  ;;  %v287_v42 = vld [vmem:[%s2706_s29 + $0xe0] sm:$0xff]  ;;  %v285_v43 = vld [vmem:[%s2706_s29 + $0xd0] sm:$0xff]  ;;  %4294 = vst [vmem:[#allocation10_spill] sm:$0xff] %v2778_v61 }
  0x1c   : > { %v278_v44 = vld [vmem:[%s2706_s29 + $0x98] sm:$0xff]  ;;  %v289_v46 = vld [vmem:[%s2706_s29 + $0xf0] sm:$0xff]  ;;  %v249_v52 = vld [vmem:[%s2745_s8] sm:$0xff] }
  0x1d   : > { %v282_v47 = vld [vmem:[%s2706_s29 + $0xb8] sm:$0xff]  ;;  %v322_v62 = vrot.slane %v249_v52, %v2750_v51  ;;  %v250_v63 = vld [vmem:[%s2745_s8 + $0x8] sm:$0xff]  ;;  %v326_v0 = vrot.slane %v249_v52, %v2754_v53  ;;  %v550_v1 = vrot.slane %v249_v52, %v2757_v54  ;;  %v244_v3 = vld [vmem:[%s4184_s3 + $0x10] sm:$0xff]  ;;  %v554_v4 = vrot.slane %v249_v52, %v2766_v57 }
  0x1e   : > { %v290_v49 = vld [vmem:[%s2706_s29 + $0xf8] sm:$0xff]  ;;  %v842_v5 = vrot.slane %v249_v52, %v2769_v58  ;;  %v846_v6 = vrot.slane %v249_v52, %v2772_v59  ;;  %v1134_v7 = vrot.slane %v249_v52, %v2775_v60 }
  0x1f   : > { %544 = vperm.xlu1 %2428, %v233_v9   ;;  %308 = vperm.xlu0 %2427, %v229_v10   ;;  %v286_v50 = vld [vmem:[%s2706_s29 + $0xd8] sm:$0xff]  ;;  %v2795_v8 = vrot.slane %v322_v62, %v2750_v51  ;;  %v1138_v9 = vrot.slane %v249_v52, %v2778_v61  ;;  %v330_v10 = vrot.slane %v250_v63, %v2750_v51 }
  0x20   : > { %v245_v2 = vld [vmem:[%s4184_s3 + $0x18] sm:$0xff] }
  0x21   : > { %4295 = vst [vmem:[#allocation11_spill] sm:$0xff] %v2795_v8 }
  0x23   : > { %1113 = vperm.xlu1 %2428, %v238_v11   ;;  %831 = vperm.xlu0 %2427, %v236_v12   ;;  %v334_v11 = vrot.slane %v250_v63, %v2754_v53  ;;  %v558_v12 = vrot.slane %v250_v63, %v2757_v54 }
  0x27   : > { %836 = vperm.xlu1 %2428, %v237_v13   ;;  %1118 = vperm.xlu0 %2427, %v239_v14   ;;  %v562_v13 = vrot.slane %v250_v63, %v2766_v57  ;;  %v850_v14 = vrot.slane %v250_v63, %v2769_v58 }
  0x2b   : > { %1128 = vperm.xlu1 %2428, %v241_v15   ;;  %1123 = vperm.xlu0 %2427, %v240_v16   ;;  %v2804_v15 = vrot.slane %v326_v0, %v2750_v51  ;;  %v2807_v16 = vrot.slane %v550_v1, %v2757_v54 }
  0x2d   : > { %4296 = vst [vmem:[#allocation12_spill] sm:$0xff] %v2804_v15  ;;  %4297 = vst [vmem:[#allocation13_spill] sm:$0xff] %v2807_v16 }
  0x2f   : > { %1410 = vperm.xlu1 %2428, %v260_v17   ;;  %1405 = vperm.xlu0 %2427, %v259_v18   ;;  %v854_v17 = vrot.slane %v250_v63, %v2772_v59  ;;  %v2811_v18 = vrot.slane %v554_v4, %v2757_v54 }
  0x31   : > { %4298 = vst [vmem:[#allocation14_spill] sm:$0xff] %v2811_v18 }
  0x33   : > { %1430 = vperm.xlu1 %2428, %v264_v19   ;;  %1425 = vperm.xlu0 %2427, %v263_v20   ;;  %v2814_v19 = vrot.slane %v842_v5, %v2769_v58  ;;  %v2817_v20 = vrot.slane %v846_v6, %v2769_v58 }
  0x35   : > { %4299 = vst [vmem:[#allocation15_spill] sm:$0xff] %v2814_v19 }
  0x37   : > { %1450 = vperm.xlu1 %2428, %v268_v21   ;;  %1445 = vperm.xlu0 %2427, %v267_v22   ;;  %v2820_v21 = vrot.slane %v1134_v7, %v2775_v60  ;;  %v251_v22 = vld [vmem:[%s2745_s8 + $0x10] sm:$0xff]  ;;  %v254_v7 = vld [vmem:[%s2745_s8 + $0x28] sm:$0xff] }
  0x3b   : > { %1435 = vperm.xlu1 %2428, %v265_v23   ;;  %1415 = vperm.xlu0 %2427, %v261_v24   ;;  %v2824_v23 = vrot.slane %v1138_v9, %v2775_v60  ;;  %v2827_v24 = vrot.slane %v330_v10, %v2750_v51 }
  0x3d   : > { %4300 = vst [vmem:[#allocation16_spill] sm:$0xff] %v2827_v24 }
  0x3f   : > { %1470 = vperm.xlu1 %2428, %v272_v25   ;;  %1465 = vperm.xlu0 %2427, %v271_v26   ;;  %v1142_v25 = vrot.slane %v250_v63, %v2775_v60  ;;  %v1146_v26 = vrot.slane %v250_v63, %v2778_v61 }
  0x43   : > { %1485 = vperm.xlu1 %2428, %v275_v27   ;;  %1455 = vperm.xlu0 %2427, %v269_v28   ;;  %v2832_v27 = vrot.slane %v334_v11, %v2750_v51  ;;  %v2835_v28 = vrot.slane %v558_v12, %v2757_v54 }
  0x45   : > { %4301 = vst [vmem:[#allocation17_spill] sm:$0xff] %v2832_v27  ;;  %4302 = vst [vmem:[#allocation18_spill] sm:$0xff] %v2835_v28 }
  0x47   : > { %1420 = vperm.xlu1 %2428, %v262_v29   ;;  %1490 = vperm.xlu0 %2427, %v276_v30   ;;  %v2838_v29 = vrot.slane %v562_v13, %v2757_v54  ;;  %v2841_v30 = vrot.slane %v850_v14, %v2769_v58 }
  0x49   : > { %4303 = vst [vmem:[#allocation19_spill] sm:$0xff] %v2838_v29  ;;  %4304 = vst [vmem:[#allocation20_spill] sm:$0xff] %v2841_v30 }
  0x4b   : > { %1475 = vperm.xlu1 %2428, %v273_v31   ;;  %1440 = vperm.xlu0 %2427, %v266_v32   ;;  %v252_v31 = vld [vmem:[%s2745_s8 + $0x18] sm:$0xff]  ;;  %v2845_v32 = vrot.slane %v854_v17, %v2769_v58 }
  0x4c   : > { %v870_v62 = vrot.slane %v252_v31, %v2772_v59  ;;  %v1158_v14 = vrot.slane %v252_v31, %v2775_v60  ;;  %v1162_v17 = vrot.slane %v252_v31, %v2778_v61 }
  0x4d   : > { %4305 = vst [vmem:[#allocation21_spill] sm:$0xff] %v2845_v32 }
  0x4e   : > { %v2911_v13 = vrot.slane %v870_v62, %v2769_v58 }
  0x4f   : > { %1510 = vperm.xlu1 %2428, %v280_v33   ;;  %1505 = vperm.xlu0 %2427, %v279_v34   ;;  %v338_v33 = vrot.slane %v251_v22, %v2750_v51  ;;  %v342_v34 = vrot.slane %v251_v22, %v2754_v53 }
  0x50   : > { %4318 = vst [vmem:[#allocation34_spill] sm:$0xff] %v2911_v13 }
  0x51   : > { %v2868_v52 = vrot.slane %v338_v33, %v2750_v51 }
  0x53   : > { %1495 = vperm.xlu1 %2428, %v277_v35   ;;  %1460 = vperm.xlu0 %2427, %v270_v36   ;;  %v566_v35 = vrot.slane %v251_v22, %v2757_v54  ;;  %v570_v36 = vrot.slane %v251_v22, %v2766_v57  ;;  %4308 = vst [vmem:[#allocation24_spill] sm:$0xff] %v2868_v52 }
  0x55   : > { %v2878_v63 = vrot.slane %v570_v36, %v2757_v54 }
  0x57   : > { %1530 = vperm.xlu1 %2428, %v284_v37   ;;  %1525 = vperm.xlu0 %2427, %v283_v38   ;;  %v858_v37 = vrot.slane %v251_v22, %v2769_v58  ;;  %v862_v38 = vrot.slane %v251_v22, %v2772_v59  ;;  %4311 = vst [vmem:[#allocation27_spill] sm:$0xff] %v2878_v63 }
  0x59   : > { %v2881_v0 = vrot.slane %v858_v37, %v2769_v58  ;;  %v2884_v1 = vrot.slane %v862_v38, %v2769_v58  ;;  %v366_v38 = vrot.slane %v254_v7, %v2754_v53 }
  0x5b   : > { %1515 = vperm.xlu1 %2428, %v281_v39   ;;  %1480 = vperm.xlu0 %2427, %v274_v40   ;;  %v1150_v39 = vrot.slane %v251_v22, %v2775_v60  ;;  %v2855_v40 = vrot.slane %v1142_v25, %v2775_v60  ;;  %4312 = vst [vmem:[#allocation28_spill] sm:$0xff] %v2884_v1  ;;  %v255_v25 = vld [vmem:[%s2745_s8 + $0x30] sm:$0xff] }
  0x5d   : > { %4306 = vst [vmem:[#allocation22_spill] sm:$0xff] %v2855_v40 }
  0x5f   : > { %1550 = vperm.xlu1 %2428, %v288_v41   ;;  %1545 = vperm.xlu0 %2427, %v287_v42   ;;  %v2858_v41 = vrot.slane %v1146_v26, %v2775_v60  ;;  %v1154_v42 = vrot.slane %v251_v22, %v2778_v61 }
  0x61   : > { %4307 = vst [vmem:[#allocation23_spill] sm:$0xff] %v2858_v41 }
  0x63   : > { %1535 = vperm.xlu1 %2428, %v285_v43   ;;  %1500 = vperm.xlu0 %2427, %v278_v44   ;;  %v346_v43 = vrot.slane %v252_v31, %v2750_v51  ;;  %v350_v44 = vrot.slane %v252_v31, %v2754_v53 }
  0x65   : > { %v2893_v4 = vrot.slane %v346_v43, %v2750_v51  ;;  %v2899_v9 = vrot.slane %v350_v44, %v2750_v51  ;;  %v370_v43 = vrot.slane %v255_v25, %v2750_v51  ;;  %v374_v44 = vrot.slane %v255_v25, %v2754_v53 }
  0x67   : > { %1555 = vperm.xlu1 %2428, %v289_v46   ;;  %1520 = vperm.xlu0 %2427, %v282_v47   ;;  %v574_v46 = vrot.slane %v252_v31, %v2757_v54  ;;  %v578_v47 = vrot.slane %v252_v31, %v2766_v57  ;;  %v2975_v48 = vrot.slane %v370_v43, %v2750_v51 }
  0x69   : > { %v2902_v10 = vrot.slane %v574_v46, %v2757_v54  ;;  %v2905_v11 = vrot.slane %v578_v47, %v2757_v54  ;;  %v2932_v46 = vrot.slane %v1158_v14, %v2775_v60  ;;  %v2935_v47 = vrot.slane %v1162_v17, %v2775_v60  ;;  %4334 = vst [vmem:[#allocation50_spill] sm:$0xff] %v2975_v48 }
  0x6a   : > { %v1186_v48 = vrot.slane %v255_v25, %v2778_v61 }
  0x6b   : > { %1560 = vperm.xlu1 %2428, %v290_v49   ;;  %1540 = vperm.xlu0 %2427, %v286_v50   ;;  %v866_v49 = vrot.slane %v252_v31, %v2769_v58  ;;  %v253_v50 = vld [vmem:[%s2745_s8 + $0x20] sm:$0xff]  ;;  %4315 = vst [vmem:[#allocation31_spill] sm:$0xff] %v2902_v10  ;;  %4316 = vst [vmem:[#allocation32_spill] sm:$0xff] %v2905_v11 }
  0x6c   : > { %v354_v5 = vrot.slane %v253_v50, %v2750_v51  ;;  %v358_v6 = vrot.slane %v253_v50, %v2754_v53  ;;  %v582_v22 = vrot.slane %v253_v50, %v2757_v54  ;;  %v586_v26 = vrot.slane %v253_v50, %v2766_v57  ;;  %4320 = vst [vmem:[#allocation36_spill] sm:$0xff] %v2932_v46 }
  0x6d   : > { %v2908_v12 = vrot.slane %v866_v49, %v2769_v58  ;;  %v874_v33 = vrot.slane %v253_v50, %v2769_v58  ;;  %v1166_v36 = vrot.slane %v253_v50, %v2775_v60  ;;  %v1170_v37 = vrot.slane %v253_v50, %v2778_v61  ;;  %4321 = vst [vmem:[#allocation37_spill] sm:$0xff] %v2935_v47 }
  0x6e   : > { %v2926_v31 = vrot.slane %v354_v5, %v2750_v51  ;;  %v2938_v49 = vrot.slane %v358_v6, %v2750_v51  ;;  %v2944_v62 = vrot.slane %v586_v26, %v2757_v54 }
  0x6f   : > { %1698 = vperm.xlu1 %2428, %v243_v55   ;;  %1693 = vperm.xlu0 %2427, %v242_v56   ;;  %v2871_v55 = vrot.slane %v342_v34, %v2750_v51  ;;  %v2874_v56 = vrot.slane %v566_v35, %v2757_v54  ;;  %4317 = vst [vmem:[#allocation33_spill] sm:$0xff] %v2908_v12 }
  0x70   : > { %v878_v34 = vrot.slane %v253_v50, %v2772_v59  ;;  %v362_v35 = vrot.slane %v254_v7, %v2750_v51  ;;  %4319 = vst [vmem:[#allocation35_spill] sm:$0xff] %v2926_v31  ;;  %4322 = vst [vmem:[#allocation38_spill] sm:$0xff] %v2938_v49  ;;  %v2941_v50 = vrot.slane %v582_v22, %v2757_v54 }
  0x71   : > { %4309 = vst [vmem:[#allocation25_spill] sm:$0xff] %v2871_v55  ;;  %4310 = vst [vmem:[#allocation26_spill] sm:$0xff] %v2874_v56  ;;  %v2947_v5 = vrot.slane %v874_v33, %v2769_v58  ;;  %v2956_v17 = vrot.slane %v1166_v36, %v2775_v60  ;;  %v2959_v6 = vrot.slane %v1170_v37, %v2775_v60  ;;  %v2968_v33 = vld [vmem:[%s2745_s8 + $0x38] sm:$0xff] }
  0x72   : > { %4323 = vst [vmem:[#allocation39_spill] sm:$0xff] %v2941_v50  ;;  %4324 = vst [vmem:[#allocation40_spill] sm:$0xff] %v2944_v62  ;;  %v2950_v45 = vrot.slane %v878_v34, %v2769_v58  ;;  %v2953_v14 = vrot.slane %v362_v35, %v2750_v51  ;;  %v2962_v22 = vrot.slane %v366_v38, %v2750_v51 }
  0x73   : > { %1708 = vperm.xlu1 %2428, %v245_v2   ;;  %1703 = vperm.xlu0 %2427, %v244_v3   ;;  %v2887_v2 = vrot.slane %v1150_v39, %v2775_v60  ;;  %v2890_v3 = vrot.slane %v1154_v42, %v2775_v60  ;;  %v590_v39 = vrot.slane %v254_v7, %v2757_v54 }
  0x74   : > { %v594_v42 = vrot.slane %v254_v7, %v2766_v57  ;;  %4325 = vst [vmem:[#allocation41_spill] sm:$0xff] %v2947_v5  ;;  %4326 = vst [vmem:[#allocation42_spill] sm:$0xff] %v2950_v45  ;;  %v882_v35 = vrot.slane %v254_v7, %v2769_v58  ;;  %v2978_v36 = vrot.slane %v374_v44, %v2750_v51 }
  0x75   : > { %4313 = vst [vmem:[#allocation29_spill] sm:$0xff] %v2887_v2  ;;  %4314 = vst [vmem:[#allocation30_spill] sm:$0xff] %v2890_v3  ;;  %v2965_v26 = vrot.slane %v590_v39, %v2757_v54  ;;  %v886_v37 = vrot.slane %v254_v7, %v2772_v59  ;;  %v1174_v38 = vrot.slane %v254_v7, %v2775_v60 }
  0x76   : > { %4327 = vst [vmem:[#allocation43_spill] sm:$0xff] %v2953_v14  ;;  %4328 = vst [vmem:[#allocation44_spill] sm:$0xff] %v2956_v17  ;;  %v2971_v34 = vrot.slane %v594_v42, %v2757_v54  ;;  %v1178_v39 = vrot.slane %v254_v7, %v2778_v61  ;;  %v890_v42 = vrot.slane %v255_v25, %v2769_v58 }
  0x77   : > { %4329 = vst [vmem:[#allocation45_spill] sm:$0xff] %v2959_v6  ;;  %4330 = vst [vmem:[#allocation46_spill] sm:$0xff] %v2962_v22  ;;  %v602_v22 = vrot.slane %v255_v25, %v2766_v57  ;;  %v382_v43 = vrot.slane %v2968_v33, %v2754_v53  ;;  %v894_v44 = vrot.slane %v255_v25, %v2772_v59 }
  0x78   : > { %4331 = vst [vmem:[#allocation47_spill] sm:$0xff] %v2965_v26  ;;  %4332 = vst [vmem:[#allocation48_spill] sm:$0xff] %v2968_v33  ;;  %v598_v26 = vrot.slane %v255_v25, %v2757_v54  ;;  %v606_v7 = vrot.slane %v2968_v33, %v2757_v54  ;;  %v2996_v14 = vrot.slane %v882_v35, %v2769_v58 }
  0x79   : > { %4333 = vst [vmem:[#allocation49_spill] sm:$0xff] %v2971_v34  ;;  %4335 = vst [vmem:[#allocation51_spill] sm:$0xff] %v2978_v36  ;;  %v378_v34 = vrot.slane %v2968_v33, %v2750_v51  ;;  %v1182_v36 = vrot.slane %v255_v25, %v2775_v60  ;;  %v610_v6 = vrot.slane %v2968_v33, %v2766_v57 }
  0x7a   : > { %4336 = vst [vmem:[#allocation52_spill] sm:$0xff] %v2996_v14  ;;  %v898_v17 = vrot.slane %v2968_v33, %v2769_v58  ;;  %v902_v53 = vrot.slane %v2968_v33, %v2772_v59  ;;  %v3005_v45 = vrot.slane %v886_v37, %v2769_v58  ;;  %v3008_v25 = vrot.slane %v1174_v38, %v2775_v60 }
  0x7b   : > { %v3011_v61 = vrot.slane %v1178_v39, %v2775_v60  ;;  %v3014_v35 = vrot.slane %v598_v26, %v2757_v54  ;;  %v3017_v57 = vrot.slane %v602_v22, %v2757_v54  ;;  %v3020_v14 = vrot.slane %v890_v42, %v2769_v58 }
  0x7c   : > { %4337 = vst [vmem:[#allocation53_spill] sm:$0xff] %v3005_v45  ;;  %4338 = vst [vmem:[#allocation54_spill] sm:$0xff] %v3008_v25  ;;  %v3023_v59 = vrot.slane %v378_v34, %v2750_v51  ;;  %v3026_v37 = vrot.slane %v382_v43, %v2750_v51  ;;  %v3029_v38 = vrot.slane %v894_v44, %v2769_v58 }
  0x7d   : > { %4339 = vst [vmem:[#allocation55_spill] sm:$0xff] %v3011_v61  ;;  %4340 = vst [vmem:[#allocation56_spill] sm:$0xff] %v3014_v35  ;;  %v3032_v39 = vrot.slane %v1182_v36, %v2775_v60  ;;  %v3035_v26 = vrot.slane %v1186_v48, %v2775_v60  ;;  %v3038_v22 = vrot.slane %v606_v7, %v2757_v54 }
  0x7e   : > { %4341 = vst [vmem:[#allocation57_spill] sm:$0xff] %v3017_v57  ;;  %4342 = vst [vmem:[#allocation58_spill] sm:$0xff] %v3020_v14  ;;  %v3045_v34 = vrot.slane %v610_v6, %v2757_v54  ;;  %v3048_v43 = vrot.slane %v898_v17, %v2769_v58  ;;  %v3051_v44 = vrot.slane %v902_v53, %v2769_v58 }
  0x7f   : > { %4343 = vst [vmem:[#allocation59_spill] sm:$0xff] %v3023_v59  ;;  %4344 = vst [vmem:[#allocation60_spill] sm:$0xff] %v3026_v37 }
  0x80   : > { %4345 = vst [vmem:[#allocation61_spill] sm:$0xff] %v3029_v38  ;;  %4346 = vst [vmem:[#allocation62_spill] sm:$0xff] %v3032_v39 }
  0x81   : > { %4347 = vst [vmem:[#allocation63_spill] sm:$0xff] %v3035_v26  ;;  %4348 = vst [vmem:[#allocation64_spill] sm:$0xff] %v3038_v22 }
  0x82   : > { %4350 = vst [vmem:[#allocation66_spill] sm:$0xff] %v3045_v34  ;;  %4351 = vst [vmem:[#allocation67_spill] sm:$0xff] %v3048_v43 }
  0x83   : > { %4352 = vst [vmem:[#allocation68_spill] sm:$0xff] %v3051_v44 }
  0x8e   : > { %v3040_v42 = vpop.permute.xlu1 %529  ;;  %v3042_v14 = vpop.permute.xlu0 %293 }
  0x8f   : > { %4349 = vst [vmem:[#allocation65_spill] sm:$0xff] %v3040_v42  ;;  %v463_v36 = vmul.f32 %v2795_v8, %v3042_v14  ;;  %v464_v7 = vmul.f32 %v2804_v15, %v3042_v14  ;;  %v691_v51 = vmul.f32 %v2807_v16, %v3040_v42  ;;  %v692_v6 = vmul.f32 %v2811_v18, %v3040_v42 }
  0x90   : > { %v471_v17 = vmul.f32 %v2827_v24, %v3042_v14  ;;  %v472_v53 = vmul.f32 %v2832_v27, %v3042_v14  ;;  %v699_v48 = vmul.f32 %v2835_v28, %v3040_v42  ;;  %v700_v58 = vmul.f32 %v2838_v29, %v3040_v42 }
  0x91   : > { %v755_v54 = vadd.f32 %v691_v51, %v463_v36  ;;  %v756_v44 = vadd.f32 %v692_v6, %v464_v7  ;;  %v479_v43 = vmul.f32 %v2868_v52, %v3042_v14  ;;  %v480_v34 = vmul.f32 %v2871_v55, %v3042_v14 }
  0x92   : > { %v3075_v22 = vpop.permute.xlu1 %534  ;;  %v3077_v37 = vpop.permute.xlu0 %298  ;;  %v763_v59 = vadd.f32 %v699_v48, %v471_v17  ;;  %v764_v26 = vadd.f32 %v700_v58, %v472_v53  ;;  %v707_v39 = vmul.f32 %v2874_v56, %v3040_v42  ;;  %v708_v38 = vmul.f32 %v2878_v63, %v3040_v42 }
  0x93   : > { %4353 = vst [vmem:[#allocation69_spill] sm:$0xff] %v3075_v22  ;;  %4354 = vst [vmem:[#allocation70_spill] sm:$0xff] %v3077_v37  ;;  %v465_v51 = vmul.f32 %v2795_v8, %v3077_v37  ;;  %v466_v36 = vmul.f32 %v2804_v15, %v3077_v37  ;;  %v693_v7 = vmul.f32 %v2807_v16, %v3075_v22 }
  0x94   : > { %v694_v6 = vmul.f32 %v2811_v18, %v3075_v22  ;;  %v473_v58 = vmul.f32 %v2827_v24, %v3077_v37  ;;  %v474_v48 = vmul.f32 %v2832_v27, %v3077_v37  ;;  %v701_v17 = vmul.f32 %v2835_v28, %v3075_v22 }
  0x95   : > { %v702_v53 = vmul.f32 %v2838_v29, %v3075_v22  ;;  %v757_v57 = vadd.f32 %v693_v7, %v465_v51  ;;  %v481_v60 = vmul.f32 %v2868_v52, %v3077_v37  ;;  %v482_v61 = vmul.f32 %v2871_v55, %v3077_v37 }
  0x96   : > { %v758_v35 = vadd.f32 %v694_v6, %v466_v36  ;;  %v3103_v25 = vpop.permute.xlu1 %539  ;;  %v3105_v45 = vpop.permute.xlu0 %303  ;;  %v765_v33 = vadd.f32 %v701_v17, %v473_v58  ;;  %v709_v62 = vmul.f32 %v2874_v56, %v3075_v22  ;;  %v710_v50 = vmul.f32 %v2878_v63, %v3075_v22 }
  0x97   : > { %4355 = vst [vmem:[#allocation71_spill] sm:$0xff] %v3103_v25  ;;  %4356 = vst [vmem:[#allocation72_spill] sm:$0xff] %v3105_v45  ;;  %v766_v5 = vadd.f32 %v702_v53, %v474_v48  ;;  %v771_v51 = vadd.f32 %v707_v39, %v479_v43  ;;  %v772_v36 = vadd.f32 %v708_v38, %v480_v34 }
  0x98   : > { %v475_v7 = vmul.f32 %v2827_v24, %v3105_v45  ;;  %v476_v6 = vmul.f32 %v2832_v27, %v3105_v45  ;;  %v773_v55 = vadd.f32 %v709_v62, %v481_v60  ;;  %v774_v52 = vadd.f32 %v710_v50, %v482_v61 }
  0x99   : > { %v703_v58 = vmul.f32 %v2835_v28, %v3103_v25  ;;  %v704_v48 = vmul.f32 %v2838_v29, %v3103_v25  ;;  %v467_v17 = vmul.f32 %v2795_v8, %v3105_v45  ;;  %v468_v38 = vmul.f32 %v2804_v15, %v3105_v45 }
  0x9a   : > { %v695_v39 = vmul.f32 %v2807_v16, %v3103_v25  ;;  %v696_v34 = vmul.f32 %v2811_v18, %v3103_v25  ;;  %v3127_v60 = vpop.permute.xlu1 %826  ;;  %v3129_v61 = vpop.permute.xlu0 %821  ;;  %v489_v43 = vmul.f32 %v2893_v4, %v3077_v37  ;;  %v490_v53 = vmul.f32 %v2899_v9, %v3077_v37 }
  0x9b   : > { %4357 = vst [vmem:[#allocation73_spill] sm:$0xff] %v3127_v60  ;;  %4358 = vst [vmem:[#allocation74_spill] sm:$0xff] %v3129_v61  ;;  %v767_v50 = vadd.f32 %v703_v58, %v475_v7  ;;  %v768_v62 = vadd.f32 %v704_v48, %v476_v6  ;;  %v985_v29 = vmul.f32 %v2814_v19, %v3127_v60 }
  0x9c   : > { %v986_v28 = vmul.f32 %v2817_v20, %v3127_v60  ;;  %v983_v27 = vmul.f32 %v2814_v19, %v3129_v61  ;;  %v984_v24 = vmul.f32 %v2817_v20, %v3129_v61  ;;  %v993_v7 = vmul.f32 %v2841_v30, %v3127_v60 }
  0x9d   : > { %v994_v6 = vmul.f32 %v2845_v32, %v3127_v60  ;;  %v991_v58 = vmul.f32 %v2841_v30, %v3129_v61  ;;  %v992_v48 = vmul.f32 %v2845_v32, %v3129_v61  ;;  %v1049_v37 = vadd.f32 %v985_v29, %v757_v57 }
  0x9e   : > { %v1050_v18 = vadd.f32 %v986_v28, %v758_v35  ;;  %v1047_v16 = vadd.f32 %v983_v27, %v755_v54  ;;  %v1048_v15 = vadd.f32 %v984_v24, %v756_v44  ;;  %v3151_v8 = vpop.permute.xlu1 %544  ;;  %v3153_v63 = vpop.permute.xlu0 %308  ;;  %v1057_v56 = vadd.f32 %v993_v7, %v765_v33 }
  0x9f   : > { %v1058_v25 = vadd.f32 %v994_v6, %v766_v5  ;;  %v1055_v45 = vadd.f32 %v991_v58, %v763_v59  ;;  %v1056_v49 = vadd.f32 %v992_v48, %v764_v26  ;;  %v1001_v31 = vmul.f32 %v2881_v0, %v3127_v60 }
  0xa0   : > { %v1002_v42 = vmul.f32 %v2884_v1, %v3127_v60  ;;  %v999_v57 = vmul.f32 %v2881_v0, %v3129_v61  ;;  %v1000_v54 = vmul.f32 %v2884_v1, %v3129_v61  ;;  %v759_v24 = vadd.f32 %v695_v39, %v467_v17 }
  0xa1   : > { %v760_v27 = vadd.f32 %v696_v34, %v468_v38  ;;  %v717_v28 = vmul.f32 %v2902_v10, %v3075_v22  ;;  %v718_v59 = vmul.f32 %v2905_v11, %v3075_v22  ;;  %v1065_v29 = vadd.f32 %v1001_v31, %v773_v55 }
  0xa2   : > { %v1066_v5 = vadd.f32 %v1002_v42, %v774_v52  ;;  %v1063_v33 = vadd.f32 %v999_v57, %v771_v51  ;;  %v1064_v35 = vadd.f32 %v1000_v54, %v772_v36  ;;  %v3167_v26 = vpop.permute.xlu1 %1113  ;;  %v3169_v44 = vpop.permute.xlu0 %831  ;;  %v1009_v17 = vmul.f32 %v2908_v12, %v3127_v60 }
  0xa3   : > { %v781_v7 = vadd.f32 %v717_v28, %v489_v43  ;;  %v782_v6 = vadd.f32 %v718_v59, %v490_v53  ;;  %v1010_v38 = vmul.f32 %v2911_v13, %v3127_v60  ;;  %v1275_v39 = vmul.f32 %v2820_v21, %v3167_v26 }
  0xa4   : > { %v1276_v52 = vmul.f32 %v2824_v23, %v3167_v26  ;;  %v1283_v55 = vmul.f32 %v2855_v40, %v3167_v26  ;;  %v1284_v31 = vmul.f32 %v2858_v41, %v3167_v26  ;;  %v1291_v42 = vmul.f32 %v2887_v2, %v3167_v26 }
  0xa5   : > { %v1292_v51 = vmul.f32 %v2890_v3, %v3167_v26  ;;  %v995_v36 = vmul.f32 %v2841_v30, %v3169_v44  ;;  %v996_v34 = vmul.f32 %v2845_v32, %v3169_v44  ;;  %v1339_v43 = vadd.f32 %v1275_v39, %v1047_v16 }
  0xa6   : > { %v1340_v53 = vadd.f32 %v1276_v52, %v1048_v15  ;;  %v3191_v58 = vadd.f32 %v1283_v55, %v1055_v45  ;;  %v3193_v48 = vadd.f32 %v1284_v31, %v1056_v49  ;;  %v3195_v57 = vpop.permute.xlu1 %836  ;;  %v3197_v54 = vpop.permute.xlu0 %1118  ;;  %v3199_v28 = vadd.f32 %v1291_v42, %v1063_v33 }
  0xa7   : > { %4359 = vst [vmem:[#allocation75_spill] sm:$0xff] %v3195_v57  ;;  %v3201_v59 = vadd.f32 %v1292_v51, %v1064_v35  ;;  %v1059_v60 = vadd.f32 %v995_v36, %v767_v50  ;;  %v1060_v22 = vadd.f32 %v996_v34, %v768_v62  ;;  %v1277_v30 = vmul.f32 %v2820_v21, %v3197_v54 }
  0xa8   : > { %v1278_v15 = vmul.f32 %v2824_v23, %v3197_v54  ;;  %v1285_v45 = vmul.f32 %v2855_v40, %v3197_v54  ;;  %v1286_v16 = vmul.f32 %v2858_v41, %v3197_v54  ;;  %v1293_v49 = vmul.f32 %v2887_v2, %v3197_v54 }
  0xa9   : > { %v1294_v33 = vmul.f32 %v2890_v3, %v3197_v54  ;;  %v987_v50 = vmul.f32 %v2814_v19, %v3169_v44  ;;  %v988_v62 = vmul.f32 %v2817_v20, %v3169_v44  ;;  %v1341_v35 = vadd.f32 %v1277_v30, %v1049_v37 }
  0xaa   : > { %v1342_v39 = vadd.f32 %v1278_v15, %v1050_v18  ;;  %v1349_v52 = vadd.f32 %v1285_v45, %v1057_v56  ;;  %v1350_v55 = vadd.f32 %v1286_v16, %v1058_v25  ;;  %v3219_v31 = vpop.permute.xlu1 %1128  ;;  %v3221_v42 = vpop.permute.xlu0 %1123  ;;  %v1357_v51 = vadd.f32 %v1293_v49, %v1065_v29 }
  0xab   : > { %v1358_v36 = vadd.f32 %v1294_v33, %v1066_v5  ;;  %v1051_v34 = vadd.f32 %v987_v50, %v759_v24  ;;  %v1052_v32 = vadd.f32 %v988_v62, %v760_v27  ;;  %v1287_v57 = vmul.f32 %v2855_v40, %v3221_v42 }
  0xac   : > { %v1288_v19 = vmul.f32 %v2858_v41, %v3221_v42  ;;  %v1279_v30 = vmul.f32 %v2820_v21, %v3221_v42  ;;  %v1280_v18 = vmul.f32 %v2824_v23, %v3221_v42  ;;  %v1073_v56 = vadd.f32 %v1009_v17, %v781_v7 }
  0xad   : > { %v1074_v25 = vadd.f32 %v1010_v38, %v782_v6  ;;  %v1301_v37 = vmul.f32 %v2932_v46, %v3197_v54  ;;  %v1302_v24 = vmul.f32 %v2935_v47, %v3197_v54  ;;  %v3235_v27 = vadd.f32 %v1287_v57, %v1059_v60  ;;  %v4360_v57 = vld [vmem:[#allocation65_spill] sm:$0xff] }
  0xae   : > { %v3237_v29 = vadd.f32 %v1288_v19, %v1060_v22  ;;  %v3239_v5 = vadd.f32 %v1279_v30, %v1051_v34  ;;  %v3241_v15 = vadd.f32 %v1280_v18, %v1052_v32  ;;  %v1411_v45 = vpop.permute.xlu1 %1410  ;;  %v1406_v16 = vpop.permute.xlu0 %1405  ;;  %v487_v6 = vmul.f32 %v2893_v4, %v3042_v14 }
  0xaf   : > { %v3243_v49 = vadd.f32 %v1301_v37, %v1073_v56  ;;  %v3245_v7 = vadd.f32 %v1302_v24, %v1074_v25  ;;  %v488_v17 = vmul.f32 %v2899_v9, %v3042_v14  ;;  %v1565_v60 = vadd.f32 %v1411_v45, %v1341_v35  ;;  %v4362_v25 = vld [vmem:[#allocation38_spill] sm:$0xff] }
  0xb0   : > { %v1566_v38 = vadd.f32 %v1411_v45, %v1342_v39  ;;  %v1563_v19 = vadd.f32 %v1406_v16, %v1339_v43  ;;  %v1564_v22 = vadd.f32 %v1406_v16, %v1340_v53  ;;  %v715_v32 = vmul.f32 %v2902_v10, %v4360_v57  ;;  %v4361_v53 = vld [vmem:[#allocation35_spill] sm:$0xff] }
  0xb1   : > { %v716_v33 = vmul.f32 %v2905_v11, %v4360_v57  ;;  %v1007_v50 = vmul.f32 %v2908_v12, %v3129_v61  ;;  %v1008_v62 = vmul.f32 %v2911_v13, %v3129_v61  ;;  %2437 = vtanh.f32 %v1565_v60 }
  0xb2   : > { %v1299_v34 = vmul.f32 %v2932_v46, %v3167_v26  ;;  %v1300_v43 = vmul.f32 %v2935_v47, %v3167_v26  ;;  %v495_v35 = vmul.f32 %v4361_v53, %v3042_v14  ;;  %2439 = vtanh.f32 %v1566_v38  ;;  %v1431_v39 = vpop.permute.xlu1 %1430  ;;  %v1426_v30 = vpop.permute.xlu0 %1425  ;;  %v4363_v38 = vld [vmem:[#allocation39_spill] sm:$0xff] }
  0xb3   : > { %v779_v18 = vadd.f32 %v715_v32, %v487_v6  ;;  %v780_v56 = vadd.f32 %v716_v33, %v488_v17  ;;  %v496_v37 = vmul.f32 %v4362_v25, %v3042_v14  ;;  %2441 = vtanh.f32 %v1563_v19  ;;  %v4364_v6 = vld [vmem:[#allocation40_spill] sm:$0xff]  ;;  %v4365_v32 = vld [vmem:[#allocation41_spill] sm:$0xff] }
  0xb4   : > { %v1573_v24 = vadd.f32 %v1431_v39, %v1349_v52  ;;  %v1574_v45 = vadd.f32 %v1431_v39, %v1350_v55  ;;  %v1571_v16 = vadd.f32 %v1426_v30, %v3191_v58  ;;  %2443 = vtanh.f32 %v1564_v22  ;;  %v4366_v22 = vld [vmem:[#allocation42_spill] sm:$0xff] }
  0xb5   : > { %v1572_v60 = vadd.f32 %v1426_v30, %v3193_v48  ;;  %v1071_v41 = vadd.f32 %v1007_v50, %v779_v18  ;;  %v1072_v40 = vadd.f32 %v1008_v62, %v780_v56  ;;  %v723_v47 = vmul.f32 %v4363_v38, %v4360_v57 }
  0xb6   : > { %2445 = vtanh.f32 %v1573_v24  ;;  %v724_v17 = vmul.f32 %v4364_v6, %v4360_v57  ;;  %v1015_v33 = vmul.f32 %v4365_v32, %v3129_v61  ;;  %v1451_v52 = vpop.permute.xlu1 %1450  ;;  %v1446_v55 = vpop.permute.xlu0 %1445  ;;  %v1016_v48 = vmul.f32 %v4366_v22, %v3129_v61  ;;  %v4367_v24 = vld [vmem:[#allocation44_spill] sm:$0xff] }
  0xb7   : > { %2447 = vtanh.f32 %v1574_v45  ;;  %v1363_v19 = vadd.f32 %v1299_v34, %v1071_v41  ;;  %v1364_v58 = vadd.f32 %v1300_v43, %v1072_v40  ;;  %v1581_v50 = vadd.f32 %v1451_v52, %v1357_v51  ;;  %v4368_v41 = vld [vmem:[#allocation45_spill] sm:$0xff]  ;;  %v4369_v34 = vld [vmem:[#allocation72_spill] sm:$0xff] }
  0xb8   : > { %2449 = vtanh.f32 %v1571_v16  ;;  %v1582_v62 = vadd.f32 %v1451_v52, %v1358_v36  ;;  %v1579_v39 = vadd.f32 %v1446_v55, %v3199_v28  ;;  %v1580_v30 = vadd.f32 %v1446_v55, %v3201_v59  ;;  %v4370_v43 = vld [vmem:[#allocation24_spill] sm:$0xff] }
  0xb9   : > { %2451 = vtanh.f32 %v1572_v60  ;;  %v787_v18 = vadd.f32 %v723_v47, %v495_v35  ;;  %v788_v56 = vadd.f32 %v724_v17, %v496_v37  ;;  %v1307_v45 = vmul.f32 %v4367_v24, %v3167_v26  ;;  %v4371_v60 = vld [vmem:[#allocation25_spill] sm:$0xff] }
  0xba   : > { %2453 = vtanh.f32 %v1581_v50  ;;  %v1308_v40 = vmul.f32 %v4368_v41, %v3167_v26  ;;  %v483_v61 = vmul.f32 %v4370_v43, %v4369_v34  ;;  %v1436_v51 = vpop.permute.xlu1 %1435  ;;  %v1416_v36 = vpop.permute.xlu0 %1415  ;;  %v484_v59 = vmul.f32 %v4371_v60, %v4369_v34 }
  0xbb   : > { %2455 = vtanh.f32 %v1582_v62  ;;  %v1079_v16 = vadd.f32 %v1015_v33, %v787_v18  ;;  %v1080_v28 = vadd.f32 %v1016_v48, %v788_v56  ;;  %v3287_v47 = vpop.eup %2437  ;;  %v1575_v35 = vadd.f32 %v1436_v51, %v3235_v27  ;;  %v4375_v62 = vld [vmem:[#allocation71_spill] sm:$0xff]  ;;  %v4376_v18 = vld [vmem:[#allocation26_spill] sm:$0xff] }
  0xbc   : > { %4372 = vst [vmem:[#allocation65_spill] sm:$0xff] %v3287_v47  ;;  %2457 = vtanh.f32 %v1579_v39  ;;  %v1576_v37 = vadd.f32 %v1436_v51, %v3237_v29  ;;  %v1567_v17 = vadd.f32 %v1416_v36, %v3239_v5  ;;  %v3292_v52 = vpop.eup %2439  ;;  %v1568_v55 = vadd.f32 %v1416_v36, %v3241_v15  ;;  %v4377_v39 = vld [vmem:[#allocation27_spill] sm:$0xff] }
  0xbd   : > { %4373 = vst [vmem:[#allocation35_spill] sm:$0xff] %v3292_v52  ;;  %2459 = vtanh.f32 %v1580_v30  ;;  %v1371_v50 = vadd.f32 %v1307_v45, %v1079_v16  ;;  %v1372_v33 = vadd.f32 %v1308_v40, %v1080_v28  ;;  %v3295_v48 = vpop.eup %2441  ;;  %v711_v56 = vmul.f32 %v4376_v18, %v4375_v62 }
  0xbe   : > { %4374 = vst [vmem:[#allocation38_spill] sm:$0xff] %v3295_v48  ;;  %2461 = vtanh.f32 %v1575_v35  ;;  %v712_v27 = vmul.f32 %v4377_v39, %v4375_v62  ;;  %v1003_v29 = vmul.f32 %v2881_v0, %v3169_v44  ;;  %v3303_v5 = vpop.eup %2443  ;;  %v1471_v30 = vpop.permute.xlu1 %1470  ;;  %v1004_v15 = vmul.f32 %v2884_v1, %v3169_v44  ;;  %v4382_v1 = vld [vmem:[#allocation11_spill] sm:$0xff] }
  0xbf   : > { %4378 = vst [vmem:[#allocation41_spill] sm:$0xff] %v3303_v5  ;;  %2463 = vtanh.f32 %v1576_v37  ;;  %v1466_v51 = vpop.permute.xlu0 %1465  ;;  %v1295_v45 = vmul.f32 %v2887_v2, %v3221_v42  ;;  %v1296_v40 = vmul.f32 %v2890_v3, %v3221_v42  ;;  %v1589_v16 = vadd.f32 %v1471_v30, %v3243_v49  ;;  %v4384_v49 = vld [vmem:[#allocation13_spill] sm:$0xff] }
  0xc0   : > { %v3311_v36 = vpop.eup %2445  ;;  %2465 = vtanh.f32 %v1567_v17  ;;  %v1590_v28 = vadd.f32 %v1471_v30, %v3245_v7  ;;  %v1587_v35 = vadd.f32 %v1466_v51, %v1363_v19  ;;  %v1588_v52 = vadd.f32 %v1466_v51, %v1364_v58  ;;  %v4388_v51 = vld [vmem:[#allocation10_spill] sm:$0xff] }
  0xc1   : > { %4379 = vst [vmem:[#allocation72_spill] sm:$0xff] %v3311_v36  ;;  %v3315_v37 = vpop.eup %2447  ;;  %2467 = vtanh.f32 %v1568_v55  ;;  %v775_v47 = vadd.f32 %v711_v56, %v483_v61  ;;  %v776_v5 = vadd.f32 %v712_v27, %v484_v59  ;;  %v469_v3 = vmul.f32 %v4382_v1, %v3153_v63  ;;  %v4383_v36 = vld [vmem:[#allocation12_spill] sm:$0xff]  ;;  %v4386_v61 = vld [vmem:[#allocation14_spill] sm:$0xff] }
  0xc2   : > { %4380 = vst [vmem:[#allocation24_spill] sm:$0xff] %v3315_v37  ;;  %v3317_v48 = vpop.eup %2449  ;;  %2469 = vtanh.f32 %v1589_v16  ;;  %v470_v17 = vmul.f32 %v4383_v36, %v3153_v63  ;;  %v697_v2 = vmul.f32 %v4384_v49, %v3151_v8  ;;  %v1486_v19 = vpop.permute.xlu1 %1485  ;;  %v698_v59 = vmul.f32 %v4386_v61, %v3151_v8  ;;  %v4389_v36 = vld [vmem:[#allocation48_spill] sm:$0xff] }
  0xc3   : > { %4381 = vst [vmem:[#allocation25_spill] sm:$0xff] %v3317_v48  ;;  %v3325_v7 = vpop.eup %2451  ;;  %2471 = vtanh.f32 %v1590_v28  ;;  %v1067_v55 = vadd.f32 %v1003_v29, %v775_v47  ;;  %v1068_v58 = vadd.f32 %v1004_v15, %v776_v5  ;;  %v1595_v27 = vadd.f32 %v1486_v19, %v1371_v50  ;;  %v1456_v30 = vpop.permute.xlu0 %1455  ;;  %v4392_v5 = vld [vmem:[#allocation75_spill] sm:$0xff] }
  0xc4   : > { %4385 = vst [vmem:[#allocation71_spill] sm:$0xff] %v3325_v7  ;;  %v3329_v56 = vpop.eup %2453  ;;  %2473 = vtanh.f32 %v1587_v35  ;;  %v1596_v1 = vadd.f32 %v1486_v19, %v1372_v33  ;;  %v761_v7 = vadd.f32 %v697_v2, %v469_v3  ;;  %v762_v29 = vadd.f32 %v698_v59, %v470_v17  ;;  %v4393_v15 = vld [vmem:[#allocation15_spill] sm:$0xff]  ;;  %v4396_v17 = vld [vmem:[#allocation70_spill] sm:$0xff]  ;;  %v4398_v59 = vld [vmem:[#allocation69_spill] sm:$0xff] }
  0xc5   : > { %4387 = vst [vmem:[#allocation26_spill] sm:$0xff] %v3329_v56  ;;  %v3333_v37 = vpop.eup %2455  ;;  %2475 = vtanh.f32 %v1588_v52  ;;  %v1359_v49 = vadd.f32 %v1295_v45, %v1067_v55  ;;  %v1360_v28 = vadd.f32 %v1296_v40, %v1068_v58  ;;  %v989_v61 = vmul.f32 %v4393_v15, %v4392_v5 }
  0xc6   : > { %4390 = vst [vmem:[#allocation27_spill] sm:$0xff] %v3333_v37  ;;  %v3335_v47 = vpop.eup %2457  ;;  %v990_v50 = vmul.f32 %v2817_v20, %v4392_v5  ;;  %v1281_v33 = vmul.f32 %v2820_v21, %v3219_v31  ;;  %2477 = vtanh.f32 %v1595_v27  ;;  %v1282_v2 = vmul.f32 %v2824_v23, %v3219_v31  ;;  %v1421_v21 = vpop.permute.xlu1 %1420 }
  0xc7   : > { %4391 = vst [vmem:[#allocation11_spill] sm:$0xff] %v3335_v47  ;;  %v3343_v35 = vpop.eup %2459  ;;  %v1583_v19 = vadd.f32 %v1456_v30, %v1359_v49  ;;  %v1584_v52 = vadd.f32 %v1456_v30, %v1360_v28  ;;  %v1053_v45 = vadd.f32 %v989_v61, %v761_v7  ;;  %v497_v55 = vmul.f32 %v4361_v53, %v4396_v17  ;;  %v4399_v30 = vld [vmem:[#allocation73_spill] sm:$0xff] }
  0xc8   : > { %4394 = vst [vmem:[#allocation12_spill] sm:$0xff] %v3343_v35  ;;  %v3347_v3 = vpop.eup %2461  ;;  %v1054_v40 = vadd.f32 %v990_v50, %v762_v29  ;;  %v498_v20 = vmul.f32 %v4362_v25, %v4396_v17  ;;  %2479 = vtanh.f32 %v1596_v1  ;;  %v725_v27 = vmul.f32 %v4363_v38, %v4398_v59  ;;  %v4408_v47 = vld [vmem:[#allocation17_spill] sm:$0xff] }
  0xc9   : > { %4395 = vst [vmem:[#allocation13_spill] sm:$0xff] %v3347_v3  ;;  %v3353_v58 = vpop.eup %2463  ;;  %v726_v23 = vmul.f32 %v4364_v6, %v4398_v59  ;;  %v1017_v7 = vmul.f32 %v4365_v32, %v4399_v30  ;;  %2481 = vtanh.f32 %v1583_v19  ;;  %v1345_v28 = vadd.f32 %v1281_v33, %v1053_v45 }
  0xca   : > { %4397 = vst [vmem:[#allocation14_spill] sm:$0xff] %v3353_v58  ;;  %v3361_v49 = vpop.eup %2465  ;;  %v1346_v29 = vadd.f32 %v1282_v2, %v1054_v40  ;;  %v1018_v15 = vmul.f32 %v4366_v22, %v4399_v30  ;;  %2483 = vtanh.f32 %v1584_v52  ;;  %v789_v1 = vadd.f32 %v725_v27, %v497_v55 }
  0xcb   : > { %4400 = vst [vmem:[#allocation48_spill] sm:$0xff] %v3361_v49  ;;  %v3365_v61 = vpop.eup %2467  ;;  %v790_v50 = vadd.f32 %v726_v23, %v498_v20  ;;  %v1309_v16 = vmul.f32 %v4367_v24, %v3197_v54  ;;  %v1569_v56 = vadd.f32 %v1421_v21, %v1345_v28  ;;  %v491_v19 = vmul.f32 %v2893_v4, %v4369_v34 }
  0xcc   : > { %4401 = vst [vmem:[#allocation75_spill] sm:$0xff] %v3365_v61  ;;  %v3369_v37 = vpop.eup %2469  ;;  %v1570_v35 = vadd.f32 %v1421_v21, %v1346_v29  ;;  %v492_v33 = vmul.f32 %v2899_v9, %v4369_v34  ;;  %v1081_v45 = vadd.f32 %v1017_v7, %v789_v1  ;;  %v1310_v52 = vmul.f32 %v4368_v41, %v3197_v54  ;;  %v1491_v21 = vpop.permute.xlu0 %1490  ;;  %v4412_v61 = vld [vmem:[#allocation20_spill] sm:$0xff] }
  0xcd   : > { %4402 = vst [vmem:[#allocation15_spill] sm:$0xff] %v3369_v37  ;;  %v3375_v2 = vpop.eup %2471  ;;  %v719_v40 = vmul.f32 %v2902_v10, %v4375_v62  ;;  %v720_v55 = vmul.f32 %v2905_v11, %v4375_v62  ;;  %2485 = vtanh.f32 %v1569_v56  ;;  %v1082_v27 = vadd.f32 %v1018_v15, %v790_v50  ;;  %v4407_v15 = vld [vmem:[#allocation16_spill] sm:$0xff] }
  0xce   : > { %4403 = vst [vmem:[#allocation70_spill] sm:$0xff] %v3375_v2  ;;  %v3383_v20 = vpop.eup %2473  ;;  %v1011_v23 = vmul.f32 %v2908_v12, %v3169_v44  ;;  %v1012_v7 = vmul.f32 %v2911_v13, %v3169_v44  ;;  %2487 = vtanh.f32 %v1570_v35  ;;  %v1373_v29 = vadd.f32 %v1309_v16, %v1081_v45  ;;  %v4410_v16 = vld [vmem:[#allocation18_spill] sm:$0xff]  ;;  %v1476_v45 = vpop.permute.xlu1 %1475 }
  0xcf   : > { %4404 = vst [vmem:[#allocation69_spill] sm:$0xff] %v3383_v20  ;;  %v3389_v28 = vpop.eup %2475  ;;  %v783_v1 = vadd.f32 %v719_v40, %v491_v19  ;;  %v1303_v2 = vmul.f32 %v2932_v46, %v3221_v42  ;;  %v784_v37 = vadd.f32 %v720_v55, %v492_v33  ;;  %v4406_v20 = vld [vmem:[#allocation37_spill] sm:$0xff]  ;;  %v477_v50 = vmul.f32 %v4407_v15, %v3153_v63  ;;  %v4411_v33 = vld [vmem:[#allocation19_spill] sm:$0xff] }
  0xd0   : > { %4405 = vst [vmem:[#allocation73_spill] sm:$0xff] %v3389_v28  ;;  %v1304_v56 = vmul.f32 %v4406_v20, %v3221_v42  ;;  %v478_v58 = vmul.f32 %v4408_v47, %v3153_v63  ;;  %v3399_v3 = vpop.eup %2477  ;;  %v1374_v48 = vadd.f32 %v1310_v52, %v1082_v27  ;;  %v1597_v28 = vadd.f32 %v1491_v21, %v1373_v29  ;;  %v4413_v15 = vld [vmem:[#allocation21_spill] sm:$0xff] }
  0xd1   : > { %4409 = vst [vmem:[#allocation16_spill] sm:$0xff] %v3399_v3  ;;  %v1075_v35 = vadd.f32 %v1011_v23, %v783_v1  ;;  %v705_v19 = vmul.f32 %v4410_v16, %v3151_v8  ;;  %v1076_v40 = vadd.f32 %v1012_v7, %v784_v37  ;;  %v706_v55 = vmul.f32 %v4411_v33, %v3151_v8  ;;  %v4415_v23 = vld [vmem:[#allocation22_spill] sm:$0xff]  ;;  %v4417_v16 = vld [vmem:[#allocation23_spill] sm:$0xff] }
  0xd2   : > { %v997_v49 = vmul.f32 %v4412_v61, %v4392_v5  ;;  %v998_v20 = vmul.f32 %v4413_v15, %v4392_v5  ;;  %v3409_v47 = vpop.eup %2479  ;;  %v1598_v3 = vadd.f32 %v1491_v21, %v1374_v48  ;;  %v1289_v29 = vmul.f32 %v4415_v23, %v3219_v31 }
  0xd3   : > { %4414 = vst [vmem:[#allocation17_spill] sm:$0xff] %v3409_v47  ;;  %v1367_v52 = vadd.f32 %v1303_v2, %v1075_v35  ;;  %v769_v27 = vadd.f32 %v705_v19, %v477_v50  ;;  %v3413_v1 = vpop.eup %2481  ;;  %2489 = vtanh.f32 %v1597_v28  ;;  %v1368_v37 = vadd.f32 %v1304_v56, %v1076_v40  ;;  %v4419_v47 = vld [vmem:[#allocation43_spill] sm:$0xff]  ;;  %v4420_v2 = vld [vmem:[#allocation46_spill] sm:$0xff]  ;;  %v1441_v35 = vpop.permute.xlu0 %1440 }
  0xd4   : > { %4416 = vst [vmem:[#allocation18_spill] sm:$0xff] %v3413_v1  ;;  %v770_v7 = vadd.f32 %v706_v55, %v478_v58  ;;  %v1290_v33 = vmul.f32 %v4417_v16, %v3219_v31  ;;  %v3417_v61 = vpop.eup %2483  ;;  %v505_v48 = vmul.f32 %v4419_v47, %v4396_v17  ;;  %v506_v21 = vmul.f32 %v4420_v2, %v4396_v17  ;;  %v4421_v28 = vld [vmem:[#allocation47_spill] sm:$0xff]  ;;  %v4422_v58 = vld [vmem:[#allocation49_spill] sm:$0xff]  ;;  %v4427_v1 = vld [vmem:[#allocation54_spill] sm:$0xff] }
  0xd5   : > { %4418 = vst [vmem:[#allocation19_spill] sm:$0xff] %v3417_v61  ;;  %v1591_v13 = vadd.f32 %v1476_v45, %v1367_v52  ;;  %v1061_v15 = vadd.f32 %v997_v49, %v769_v27  ;;  %v1592_v50 = vadd.f32 %v1476_v45, %v1368_v37  ;;  %v733_v56 = vmul.f32 %v4421_v28, %v4398_v59  ;;  %v4423_v52 = vld [vmem:[#allocation52_spill] sm:$0xff]  ;;  %v4424_v27 = vld [vmem:[#allocation53_spill] sm:$0xff] }
  0xd6   : > { %v1062_v19 = vadd.f32 %v998_v20, %v770_v7  ;;  %v734_v40 = vmul.f32 %v4422_v58, %v4398_v59  ;;  %2491 = vtanh.f32 %v1598_v3  ;;  %v1025_v49 = vmul.f32 %v4423_v52, %v4399_v30  ;;  %v4428_v3 = vld [vmem:[#allocation55_spill] sm:$0xff] }
  0xd7   : > { %v1353_v55 = vadd.f32 %v1289_v29, %v1061_v15  ;;  %v1026_v23 = vmul.f32 %v4424_v27, %v4399_v30  ;;  %v3431_v16 = vpop.eup %2485  ;;  %2493 = vtanh.f32 %v1591_v13  ;;  %v797_v37 = vadd.f32 %v733_v56, %v505_v48  ;;  %v4429_v56 = vld [vmem:[#allocation74_spill] sm:$0xff] }
  0xd8   : > { %4425 = vst [vmem:[#allocation20_spill] sm:$0xff] %v3431_v16  ;;  %v1354_v45 = vadd.f32 %v1290_v33, %v1062_v19  ;;  %v798_v20 = vadd.f32 %v734_v40, %v506_v21  ;;  %v3433_v7 = vpop.eup %2487  ;;  %v1317_v46 = vmul.f32 %v4427_v1, %v3197_v54  ;;  %v1318_v29 = vmul.f32 %v4428_v3, %v3197_v54  ;;  %v1511_v33 = vpop.permute.xlu1 %1510 }
  0xd9   : > { %4426 = vst [vmem:[#allocation21_spill] sm:$0xff] %v3433_v7  ;;  %v1577_v61 = vadd.f32 %v1441_v35, %v1353_v55  ;;  %v503_v15 = vmul.f32 %v4419_v47, %v3042_v14  ;;  %2495 = vtanh.f32 %v1592_v50  ;;  %v1089_v11 = vadd.f32 %v1025_v49, %v797_v37 }
  0xda   : > { %v1578_v12 = vadd.f32 %v1441_v35, %v1354_v45  ;;  %v504_v13 = vmul.f32 %v4420_v2, %v3042_v14  ;;  %v1090_v48 = vadd.f32 %v1026_v23, %v798_v20  ;;  %v731_v21 = vmul.f32 %v4421_v28, %v4360_v57  ;;  %v4430_v35 = vld [vmem:[#allocation9_spill] sm:$0xff] }
  0xdb   : > { %v732_v19 = vmul.f32 %v4422_v58, %v4360_v57  ;;  %v1023_v40 = vmul.f32 %v4423_v52, %v4429_v56  ;;  %2497 = vtanh.f32 %v1577_v61  ;;  %v1381_v55 = vadd.f32 %v1317_v46, %v1089_v11 }
  0xdc   : > { %v1024_v50 = vmul.f32 %v4424_v27, %v4429_v56  ;;  %v4431_v49 = vrot.slane %v4389_v36, %v4430_v35  ;;  %2499 = vtanh.f32 %v1578_v12  ;;  %v1382_v23 = vadd.f32 %v1318_v29, %v1090_v48  ;;  %v1506_v48 = vpop.permute.xlu0 %1505 }
  0xdd   : > { %v795_v37 = vadd.f32 %v731_v21, %v503_v15  ;;  %v1315_v20 = vmul.f32 %v4427_v1, %v3167_v26  ;;  %v3459_v7 = vpop.eup %2489  ;;  %v1605_v16 = vadd.f32 %v1511_v33, %v1381_v55  ;;  %v796_v61 = vadd.f32 %v732_v19, %v504_v13 }
  0xde   : > { %v3455_v45 = vrot.slane %v4431_v49, %v4430_v35  ;;  %4432 = vst [vmem:[#allocation22_spill] sm:$0xff] %v3459_v7  ;;  %v499_v11 = vmul.f32 %v4361_v53, %v4369_v34  ;;  %v500_v46 = vmul.f32 %v4362_v25, %v4369_v34  ;;  %v1316_v49 = vmul.f32 %v4428_v3, %v3167_v26 }
  0xdf   : > { %v1087_v10 = vadd.f32 %v1023_v40, %v795_v37  ;;  %v727_v12 = vmul.f32 %v4363_v38, %v4375_v62  ;;  %v728_v29 = vmul.f32 %v4364_v6, %v4375_v62  ;;  %v1606_v15 = vadd.f32 %v1511_v33, %v1382_v23 }
  0xe0   : > { %v1088_v21 = vadd.f32 %v1024_v50, %v796_v61  ;;  %v1019_v13 = vmul.f32 %v4365_v32, %v3169_v44  ;;  %v1020_v19 = vmul.f32 %v4366_v22, %v3169_v44  ;;  %v3475_v55 = vpop.eup %2491  ;;  %2501 = vtanh.f32 %v1605_v16  ;;  %v4449_v22 = vld [vmem:[#allocation63_spill] sm:$0xff] }
  0xe1   : > { %4433 = vst [vmem:[#allocation23_spill] sm:$0xff] %v3475_v55  ;;  %v1379_v40 = vadd.f32 %v1315_v20, %v1087_v10  ;;  %v791_v37 = vadd.f32 %v727_v12, %v499_v11  ;;  %v1311_v7 = vmul.f32 %v4367_v24, %v3221_v42  ;;  %v3479_v38 = vpop.eup %2493  ;;  %v792_v6 = vadd.f32 %v728_v29, %v500_v46  ;;  %v1496_v11 = vpop.permute.xlu1 %1495 }
  0xe2   : > { %4434 = vst [vmem:[#allocation43_spill] sm:$0xff] %v3479_v38  ;;  %v1312_v33 = vmul.f32 %v4368_v41, %v3221_v42  ;;  %v485_v50 = vmul.f32 %v4370_v43, %v3153_v63  ;;  %v486_v23 = vmul.f32 %v4371_v60, %v3153_v63  ;;  %v1380_v61 = vadd.f32 %v1316_v49, %v1088_v21  ;;  %v4436_v49 = vld [vmem:[#allocation29_spill] sm:$0xff] }
  0xe3   : > { %v1603_v55 = vadd.f32 %v1506_v48, %v1379_v40  ;;  %v1083_v16 = vadd.f32 %v1019_v13, %v791_v37  ;;  %v713_v10 = vmul.f32 %v4376_v18, %v3151_v8  ;;  %v3489_v20 = vpop.eup %2495  ;;  %2503 = vtanh.f32 %v1606_v15  ;;  %v4438_v15 = vld [vmem:[#allocation28_spill] sm:$0xff] }
  0xe4   : > { %4435 = vst [vmem:[#allocation46_spill] sm:$0xff] %v3489_v20  ;;  %v1084_v46 = vadd.f32 %v1020_v19, %v792_v6  ;;  %v714_v12 = vmul.f32 %v4377_v39, %v3151_v8  ;;  %v1005_v43 = vmul.f32 %v2881_v0, %v4392_v5  ;;  %v1604_v29 = vadd.f32 %v1506_v48, %v1380_v61  ;;  %v4440_v0 = vld [vmem:[#allocation50_spill] sm:$0xff] }
  0xe5   : > { %v1375_v38 = vadd.f32 %v1311_v7, %v1083_v16  ;;  %v777_v60 = vadd.f32 %v713_v10, %v485_v50  ;;  %v1297_v21 = vmul.f32 %v4436_v49, %v3219_v31  ;;  %v3497_v13 = vpop.eup %2497  ;;  %2505 = vtanh.f32 %v1603_v55  ;;  %v4441_v7 = vld [vmem:[#allocation51_spill] sm:$0xff]  ;;  %v1461_v16 = vpop.permute.xlu0 %1460  ;;  %v4442_v10 = vld [vmem:[#allocation30_spill] sm:$0xff]  ;;  %v4446_v49 = vld [vmem:[#allocation61_spill] sm:$0xff] }
  0xe6   : > { %4437 = vst [vmem:[#allocation47_spill] sm:$0xff] %v3497_v13  ;;  %v1376_v18 = vadd.f32 %v1312_v33, %v1084_v46  ;;  %v778_v40 = vadd.f32 %v714_v12, %v486_v23  ;;  %v1006_v6 = vmul.f32 %v4438_v15, %v4392_v5  ;;  %v3501_v19 = vpop.eup %2499  ;;  %v513_v48 = vmul.f32 %v4440_v0, %v4396_v17  ;;  %v4443_v33 = vld [vmem:[#allocation56_spill] sm:$0xff]  ;;  %v4444_v46 = vld [vmem:[#allocation57_spill] sm:$0xff]  ;;  %v4448_v13 = vld [vmem:[#allocation62_spill] sm:$0xff] }
  0xe7   : > { %4439 = vst [vmem:[#allocation49_spill] sm:$0xff] %v3501_v19  ;;  %v1599_v39 = vadd.f32 %v1496_v11, %v1375_v38  ;;  %v1069_v37 = vadd.f32 %v1005_v43, %v777_v60  ;;  %v514_v50 = vmul.f32 %v4441_v7, %v4396_v17  ;;  %v1298_v55 = vmul.f32 %v4442_v10, %v3219_v31  ;;  %v4445_v43 = vld [vmem:[#allocation58_spill] sm:$0xff] }
  0xe8   : > { %v1600_v61 = vadd.f32 %v1496_v11, %v1376_v18  ;;  %v741_v23 = vmul.f32 %v4443_v33, %v4398_v59  ;;  %v742_v12 = vmul.f32 %v4444_v46, %v4398_v59  ;;  %2507 = vtanh.f32 %v1604_v29 }
  0xe9   : > { %v1361_v38 = vadd.f32 %v1297_v21, %v1069_v37  ;;  %v1033_v60 = vmul.f32 %v4445_v43, %v4399_v30  ;;  %v1034_v15 = vmul.f32 %v4446_v49, %v4399_v30  ;;  %2509 = vtanh.f32 %v1599_v39 }
  0xea   : > { %v1070_v11 = vadd.f32 %v1006_v6, %v778_v40  ;;  %v805_v18 = vadd.f32 %v741_v23, %v513_v48  ;;  %v806_v20 = vadd.f32 %v742_v12, %v514_v50  ;;  %v3517_v19 = vpop.eup %2501  ;;  %v1325_v41 = vmul.f32 %v4448_v13, %v3197_v54  ;;  %v1531_v6 = vpop.permute.xlu1 %1530 }
  0xeb   : > { %4447 = vst [vmem:[#allocation52_spill] sm:$0xff] %v3517_v19  ;;  %v1585_v10 = vadd.f32 %v1461_v16, %v1361_v38  ;;  %v1326_v29 = vmul.f32 %v4449_v22, %v3197_v54  ;;  %v511_v21 = vmul.f32 %v4440_v0, %v3042_v14  ;;  %2511 = vtanh.f32 %v1600_v61 }
  0xec   : > { %v1362_v37 = vadd.f32 %v1298_v55, %v1070_v11  ;;  %v1097_v24 = vadd.f32 %v1033_v60, %v805_v18  ;;  %v512_v40 = vmul.f32 %v4441_v7, %v3042_v14  ;;  %v1098_v39 = vadd.f32 %v1034_v15, %v806_v20 }
  0xed   : > { %v739_v48 = vmul.f32 %v4443_v33, %v4360_v57  ;;  %v740_v50 = vmul.f32 %v4444_v46, %v4360_v57  ;;  %v1031_v23 = vmul.f32 %v4445_v43, %v4429_v56  ;;  %v3533_v12 = vpop.eup %2503  ;;  %2513 = vtanh.f32 %v1585_v10 }
  0xee   : > { %4450 = vst [vmem:[#allocation53_spill] sm:$0xff] %v3533_v12  ;;  %v1586_v38 = vadd.f32 %v1461_v16, %v1362_v37  ;;  %v1389_v61 = vadd.f32 %v1325_v41, %v1097_v24  ;;  %v4451_v55 = vrot.slane %v4389_v36, %v4388_v51  ;;  %v1390_v20 = vadd.f32 %v1326_v29, %v1098_v39  ;;  %v1526_v39 = vpop.permute.xlu0 %1525 }
  0xef   : > { %v803_v15 = vadd.f32 %v739_v48, %v511_v21  ;;  %v1032_v11 = vmul.f32 %v4446_v49, %v4429_v56  ;;  %v1323_v18 = vmul.f32 %v4448_v13, %v3167_v26  ;;  %v3545_v19 = vpop.eup %2505  ;;  %v804_v16 = vadd.f32 %v740_v50, %v512_v40 }
  0xf0   : > { %v3539_v60 = vrot.slane %v4451_v55, %v4430_v35  ;;  %4452 = vst [vmem:[#allocation74_spill] sm:$0xff] %v3545_v19  ;;  %v1613_v12 = vadd.f32 %v1531_v6, %v1389_v61  ;;  %v507_v24 = vmul.f32 %v4419_v47, %v4369_v34  ;;  %v508_v41 = vmul.f32 %v4420_v2, %v4369_v34 }
  0xf1   : > { %v1095_v36 = vadd.f32 %v1031_v23, %v803_v15  ;;  %v1324_v10 = vmul.f32 %v4449_v22, %v3167_v26  ;;  %v735_v29 = vmul.f32 %v4421_v28, %v4375_v62  ;;  %v736_v21 = vmul.f32 %v4422_v58, %v4375_v62 }
  0xf2   : > { %2515 = vtanh.f32 %v1586_v38  ;;  %v1614_v37 = vadd.f32 %v1531_v6, %v1390_v20  ;;  %v1027_v40 = vmul.f32 %v4423_v52, %v3169_v44  ;;  %v1028_v48 = vmul.f32 %v4424_v27, %v3169_v44  ;;  %v3561_v50 = vpop.eup %2507 }
  0xf3   : > { %4453 = vst [vmem:[#allocation29_spill] sm:$0xff] %v3561_v50  ;;  %2517 = vtanh.f32 %v1613_v12  ;;  %v1096_v23 = vadd.f32 %v1032_v11, %v804_v16  ;;  %v1387_v61 = vadd.f32 %v1323_v18, %v1095_v36  ;;  %v1319_v55 = vmul.f32 %v4427_v1, %v3221_v42  ;;  %v3565_v15 = vpop.eup %2509  ;;  %v4455_v11 = vld [vmem:[#allocation31_spill] sm:$0xff] }
  0xf4   : > { %4454 = vst [vmem:[#allocation28_spill] sm:$0xff] %v3565_v15  ;;  %v799_v51 = vadd.f32 %v735_v29, %v507_v24  ;;  %v800_v38 = vadd.f32 %v736_v21, %v508_v41  ;;  %v1320_v6 = vmul.f32 %v4428_v3, %v3221_v42  ;;  %v493_v20 = vmul.f32 %v2893_v4, %v3153_v63  ;;  %v4457_v24 = vld [vmem:[#allocation32_spill] sm:$0xff]  ;;  %v4458_v29 = vld [vmem:[#allocation33_spill] sm:$0xff] }
  0xf5   : > { %v1388_v35 = vadd.f32 %v1324_v10, %v1096_v23  ;;  %v1611_v19 = vadd.f32 %v1526_v39, %v1387_v61  ;;  %v494_v12 = vmul.f32 %v2899_v9, %v3153_v63  ;;  %v721_v18 = vmul.f32 %v4455_v11, %v3151_v8  ;;  %v3575_v16 = vpop.eup %2511  ;;  %v1516_v10 = vpop.permute.xlu1 %1515  ;;  %v4459_v61 = vld [vmem:[#allocation36_spill] sm:$0xff] }
  0xf6   : > { %4456 = vst [vmem:[#allocation50_spill] sm:$0xff] %v3575_v16  ;;  %v1091_v36 = vadd.f32 %v1027_v40, %v799_v51  ;;  %v1092_v50 = vadd.f32 %v1028_v48, %v800_v38  ;;  %v722_v41 = vmul.f32 %v4457_v24, %v3151_v8  ;;  %v1013_v21 = vmul.f32 %v4458_v29, %v4392_v5  ;;  %v4461_v51 = vld [vmem:[#allocation34_spill] sm:$0xff]  ;;  %v4462_v24 = vld [vmem:[#allocation59_spill] sm:$0xff] }
  0xf7   : > { %2519 = vtanh.f32 %v1614_v37  ;;  %v1612_v4 = vadd.f32 %v1526_v39, %v1388_v35  ;;  %v785_v23 = vadd.f32 %v721_v18, %v493_v20  ;;  %v1305_v9 = vmul.f32 %v4459_v61, %v3219_v31  ;;  %v3583_v15 = vpop.eup %2513  ;;  %v4463_v35 = vld [vmem:[#allocation60_spill] sm:$0xff]  ;;  %v1481_v20 = vpop.permute.xlu0 %1480  ;;  %v4464_v18 = vld [vmem:[#allocation37_spill] sm:$0xff] }
  0xf8   : > { %4460 = vst [vmem:[#allocation51_spill] sm:$0xff] %v3583_v15  ;;  %2521 = vtanh.f32 %v1611_v19  ;;  %v1383_v11 = vadd.f32 %v1319_v55, %v1091_v36  ;;  %v1384_v16 = vadd.f32 %v1320_v6, %v1092_v50  ;;  %v1014_v40 = vmul.f32 %v4461_v51, %v4392_v5  ;;  %v4465_v19 = vld [vmem:[#allocation64_spill] sm:$0xff]  ;;  %v4466_v50 = vld [vmem:[#allocation66_spill] sm:$0xff] }
  0xf9   : > { %v786_v48 = vadd.f32 %v722_v41, %v494_v12  ;;  %v1077_v38 = vadd.f32 %v1013_v21, %v785_v23  ;;  %v521_v29 = vmul.f32 %v4462_v24, %v4396_v17  ;;  %v522_v37 = vmul.f32 %v4463_v35, %v4396_v17  ;;  %v4467_v41 = vld [vmem:[#allocation67_spill] sm:$0xff]  ;;  %v4468_v23 = vld [vmem:[#allocation68_spill] sm:$0xff] }
  0xfa   : > { %v1607_v39 = vadd.f32 %v1516_v10, %v1383_v11  ;;  %v1306_v61 = vmul.f32 %v4464_v18, %v3219_v31  ;;  %v749_v55 = vmul.f32 %v4465_v19, %v4398_v59  ;;  %v750_v6 = vmul.f32 %v4466_v50, %v4398_v59 }
  0xfb   : > { %v1608_v36 = vadd.f32 %v1516_v10, %v1384_v16  ;;  %v1369_v12 = vadd.f32 %v1305_v9, %v1077_v38  ;;  %v1041_v21 = vmul.f32 %v4467_v41, %v4399_v30  ;;  %v1042_v51 = vmul.f32 %v4468_v23, %v4399_v30 }
  0xfc   : > { %v3601_v17 = vpop.eup %2515  ;;  %2523 = vtanh.f32 %v1612_v4  ;;  %v1078_v11 = vadd.f32 %v1014_v40, %v786_v48  ;;  %v813_v15 = vadd.f32 %v749_v55, %v521_v29  ;;  %v814_v18 = vadd.f32 %v750_v6, %v522_v37  ;;  %v1551_v40 = vpop.permute.xlu1 %1550 }
  0xfd   : > { %v3603_v3 = vpop.eup %2517  ;;  %v1593_v1 = vadd.f32 %v1481_v20, %v1369_v12  ;;  %v1333_v59 = vmul.f32 %v3455_v45, %v3197_v54  ;;  %v1334_v16 = vmul.f32 %v3539_v60, %v3197_v54  ;;  %v519_v10 = vmul.f32 %v4462_v24, %v3042_v14 }
  0xfe   : > { %2525 = vtanh.f32 %v1607_v39  ;;  %v1370_v30 = vadd.f32 %v1306_v61, %v1078_v11  ;;  %v1105_v9 = vadd.f32 %v1041_v21, %v813_v15  ;;  %v520_v4 = vmul.f32 %v4463_v35, %v3042_v14  ;;  %v1546_v61 = vpop.permute.xlu0 %1545 }
  0xff   : > { %2527 = vtanh.f32 %v1608_v36  ;;  %v1106_v48 = vadd.f32 %v1042_v51, %v814_v18  ;;  %v747_v38 = vmul.f32 %v4465_v19, %v4360_v57  ;;  %v748_v29 = vmul.f32 %v4466_v50, %v4360_v57 }
 0x100   : > { %v1594_v37 = vadd.f32 %v1481_v20, %v1370_v30  ;;  %2529 = vtanh.f32 %v1593_v1  ;;  %v1397_v54 = vadd.f32 %v1333_v59, %v1105_v9  ;;  %v1039_v14 = vmul.f32 %v4467_v41, %v4429_v56 }
 0x101   : > { %v3617_v55 = vpop.eup %2519  ;;  %v1398_v39 = vadd.f32 %v1334_v16, %v1106_v48  ;;  %v811_v15 = vadd.f32 %v747_v38, %v519_v10  ;;  %v1040_v6 = vmul.f32 %v4468_v23, %v4429_v56  ;;  %v812_v21 = vadd.f32 %v748_v29, %v520_v4 }
 0x102   : > { %4469 = vst [vmem:[#allocation30_spill] sm:$0xff] %v3617_v55  ;;  %v3623_v36 = vpop.eup %2521  ;;  %v1621_v12 = vadd.f32 %v1551_v40, %v1397_v54  ;;  %v515_v57 = vmul.f32 %v4440_v0, %v4369_v34  ;;  %v516_v1 = vmul.f32 %v4441_v7, %v4369_v34  ;;  %v1331_v20 = vmul.f32 %v3455_v45, %v3167_v26  ;;  %v1501_v54 = vpop.permute.xlu0 %1500 }
 0x103   : > { %v1332_v51 = vmul.f32 %v3539_v60, %v3167_v26  ;;  %v743_v11 = vmul.f32 %v4443_v33, %v4375_v62  ;;  %v744_v56 = vmul.f32 %v4444_v46, %v4375_v62  ;;  %2531 = vtanh.f32 %v1594_v37 }
 0x104   : > { %v1622_v18 = vadd.f32 %v1551_v40, %v1398_v39  ;;  %v1035_v59 = vmul.f32 %v4445_v43, %v3169_v44  ;;  %v1036_v16 = vmul.f32 %v4446_v49, %v3169_v44  ;;  %2533 = vtanh.f32 %v1621_v12  ;;  %v1536_v12 = vpop.permute.xlu1 %1535 }
 0x105   : > { %v1103_v10 = vadd.f32 %v1039_v14, %v811_v15  ;;  %v1104_v30 = vadd.f32 %v1040_v6, %v812_v21  ;;  %v1327_v26 = vmul.f32 %v4448_v13, %v3221_v42  ;;  %v807_v4 = vadd.f32 %v743_v11, %v515_v57  ;;  %v4470_v15 = vld [vmem:[#allocation39_spill] sm:$0xff] }
 0x106   : > { %v3643_v9 = vpop.eup %2523  ;;  %v808_v48 = vadd.f32 %v744_v56, %v516_v1  ;;  %v1328_v38 = vmul.f32 %v4449_v22, %v3221_v42  ;;  %v501_v40 = vmul.f32 %v4361_v53, %v3153_v63  ;;  %v502_v39 = vmul.f32 %v4362_v25, %v3153_v63  ;;  %v4471_v1 = vld [vmem:[#allocation40_spill] sm:$0xff] }
 0x107   : > { %v1395_v29 = vadd.f32 %v1331_v20, %v1103_v10  ;;  %v1396_v37 = vadd.f32 %v1332_v51, %v1104_v30  ;;  %v729_v14 = vmul.f32 %v4470_v15, %v3151_v8  ;;  %v1099_v21 = vadd.f32 %v1035_v59, %v807_v4  ;;  %v4472_v25 = vld [vmem:[#allocation44_spill] sm:$0xff] }
 0x108   : > { %v3653_v6 = vpop.eup %2525  ;;  %v1100_v57 = vadd.f32 %v1036_v16, %v808_v48  ;;  %v730_v11 = vmul.f32 %v4471_v1, %v3151_v8  ;;  %v1021_v53 = vmul.f32 %v4365_v32, %v4392_v5  ;;  %2535 = vtanh.f32 %v1622_v18  ;;  %v4473_v16 = vld [vmem:[#allocation42_spill] sm:$0xff] }
 0x109   : > { %v3659_v20 = vpop.eup %2527  ;;  %v1619_v51 = vadd.f32 %v1546_v61, %v1395_v29  ;;  %v793_v56 = vadd.f32 %v729_v14, %v501_v40  ;;  %v1313_v10 = vmul.f32 %v4472_v25, %v3219_v31  ;;  %v1620_v15 = vadd.f32 %v1546_v61, %v1396_v37  ;;  %v4474_v29 = vld [vmem:[#allocation45_spill] sm:$0xff] }
 0x10a   : > { %v3663_v30 = vpop.eup %2529  ;;  %v1391_v55 = vadd.f32 %v1327_v26, %v1099_v21  ;;  %v1392_v59 = vadd.f32 %v1328_v38, %v1100_v57  ;;  %v1022_v4 = vmul.f32 %v4473_v16, %v4392_v5  ;;  %v794_v48 = vadd.f32 %v730_v11, %v502_v39  ;;  %v3681_v21 = vpop.permute.xlu0 %1520 }
 0x10b   : > { %v1085_v1 = vadd.f32 %v1021_v53, %v793_v56  ;;  %v523_v32 = vmul.f32 %v4462_v24, %v4369_v34  ;;  %v524_v18 = vmul.f32 %v4463_v35, %v4369_v34  ;;  %v1314_v14 = vmul.f32 %v4474_v29, %v3219_v31  ;;  %v1556_v11 = vpop.permute.xlu1 %1555 }
 0x10c   : > { %v1615_v40 = vadd.f32 %v1536_v12, %v1391_v55  ;;  %v751_v61 = vmul.f32 %v4465_v19, %v4375_v62  ;;  %v752_v26 = vmul.f32 %v4466_v50, %v4375_v62  ;;  %2537 = vtanh.f32 %v1619_v51 }
 0x10d   : > { %v1377_v38 = vadd.f32 %v1313_v10, %v1085_v1  ;;  %v1043_v37 = vmul.f32 %v4467_v41, %v3169_v44  ;;  %v1044_v39 = vmul.f32 %v4468_v23, %v3169_v44  ;;  %v3683_v34 = vpop.eup %2531  ;;  %2539 = vtanh.f32 %v1620_v15 }
 0x10e   : > { %v1616_v55 = vadd.f32 %v1536_v12, %v1392_v59  ;;  %v1086_v57 = vadd.f32 %v1022_v4, %v794_v48  ;;  %v815_v53 = vadd.f32 %v751_v61, %v523_v32  ;;  %v3685_v56 = vpop.eup %2533  ;;  %v816_v51 = vadd.f32 %v752_v26, %v524_v18 }
 0x10f   : > { %v1601_v62 = vadd.f32 %v1501_v54, %v1377_v38  ;;  %v1335_v25 = vmul.f32 %v3455_v45, %v3221_v42  ;;  %v1336_v10 = vmul.f32 %v3539_v60, %v3221_v42  ;;  %2541 = vtanh.f32 %v1615_v40  ;;  %v3705_v40 = vpop.permute.xlu0 %1540  ;;  %v1561_v61 = vpop.permute.xlu1 %1560 }
 0x110   : > { %v1378_v44 = vadd.f32 %v1314_v14, %v1086_v57  ;;  %v509_v16 = vmul.f32 %v4419_v47, %v3153_v63  ;;  %v510_v12 = vmul.f32 %v4420_v2, %v3153_v63  ;;  %v1107_v15 = vadd.f32 %v1043_v37, %v815_v53  ;;  %v4475_v14 = vld [vmem:[#allocation54_spill] sm:$0xff] }
 0x111   : > { %v1108_v59 = vadd.f32 %v1044_v39, %v816_v51  ;;  %v737_v4 = vmul.f32 %v4421_v28, %v3151_v8  ;;  %v738_v48 = vmul.f32 %v4422_v58, %v3151_v8  ;;  %2543 = vtanh.f32 %v1616_v55 }
 0x112   : > { %v1602_v1 = vadd.f32 %v1501_v54, %v1378_v44  ;;  %v1029_v42 = vmul.f32 %v4423_v52, %v4392_v5  ;;  %v3701_v32 = vpop.eup %2535  ;;  %2545 = vtanh.f32 %v1601_v62  ;;  %v1399_v47 = vadd.f32 %v1335_v25, %v1107_v15  ;;  %v4476_v52 = vld [vmem:[#allocation55_spill] sm:$0xff] }
 0x113   : > { %v1400_v18 = vadd.f32 %v1336_v10, %v1108_v59  ;;  %v1030_v2 = vmul.f32 %v4424_v27, %v4392_v5  ;;  %v801_v29 = vadd.f32 %v737_v4, %v509_v16  ;;  %v802_v28 = vadd.f32 %v738_v48, %v510_v12  ;;  %v3737_v12 = vpop.permute.xlu0 %1693 }
 0x114   : > { %v1321_v58 = vmul.f32 %v4475_v14, %v3219_v31  ;;  %v525_v54 = vmul.f32 %v4462_v24, %v3153_v63  ;;  %v1322_v26 = vmul.f32 %v4476_v52, %v3219_v31  ;;  %v526_v38 = vmul.f32 %v4463_v35, %v3153_v63  ;;  %v4478_v52 = vld [vmem:[#allocation41_spill] sm:$0xff] }
 0x115   : > { %v753_v27 = vmul.f32 %v4465_v19, %v3151_v8  ;;  %v754_v37 = vmul.f32 %v4466_v50, %v3151_v8  ;;  %2547 = vtanh.f32 %v1602_v1  ;;  %v1623_v39 = vadd.f32 %v1556_v11, %v1399_v47 }
 0x116   : > { %v1093_v55 = vadd.f32 %v1029_v42, %v801_v29  ;;  %v1045_v57 = vmul.f32 %v4467_v41, %v4392_v5  ;;  %v3721_v53 = vpop.eup %2537  ;;  %v1624_v24 = vadd.f32 %v1556_v11, %v1400_v18  ;;  %v1094_v62 = vadd.f32 %v1030_v2, %v802_v28 }
 0x117   : > { %v1046_v51 = vmul.f32 %v4468_v23, %v4392_v5  ;;  %v1337_v35 = vmul.f32 %v3455_v45, %v3219_v31  ;;  %v3727_v19 = vpop.eup %2539  ;;  %v817_v50 = vadd.f32 %v753_v27, %v525_v54  ;;  %v517_v10 = vmul.f32 %v4440_v0, %v3153_v63  ;;  %v3759_v28 = vpop.permute.xlu0 %1703  ;;  %v4480_v27 = vld [vmem:[#allocation35_spill] sm:$0xff] }
 0x118   : > { %v1385_v25 = vadd.f32 %v1321_v58, %v1093_v55  ;;  %v518_v41 = vmul.f32 %v4441_v7, %v3153_v63  ;;  %v1386_v44 = vadd.f32 %v1322_v26, %v1094_v62  ;;  %v818_v16 = vadd.f32 %v754_v37, %v526_v38  ;;  %v3747_v7 = vpop.permute.xlu1 %1698  ;;  %v4481_v55 = vld [vmem:[#allocation48_spill] sm:$0xff] }
 0x119   : > { %v1338_v11 = vmul.f32 %v3539_v60, %v3219_v31  ;;  %v745_v23 = vmul.f32 %v4443_v33, %v3151_v8  ;;  %v3739_v45 = vpop.eup %2541  ;;  %v1109_v15 = vadd.f32 %v1045_v57, %v817_v50  ;;  %v746_v59 = vmul.f32 %v4444_v46, %v3151_v8 }
 0x11a   : > { %v1037_v0 = vmul.f32 %v4445_v43, %v4392_v5  ;;  %v1038_v63 = vmul.f32 %v4446_v49, %v4392_v5  ;;  %v1609_v60 = vadd.f32 %v3681_v21, %v1385_v25  ;;  %v1110_v4 = vadd.f32 %v1046_v51, %v818_v16  ;;  %v4483_v51 = vld [vmem:[#allocation20_spill] sm:$0xff]  ;;  %v4484_v25 = vld [vmem:[#allocation21_spill] sm:$0xff] }
 0x11b   : > { %v809_v33 = vadd.f32 %v745_v23, %v517_v10  ;;  %v1329_v48 = vmul.f32 %v4448_v13, %v3219_v31  ;;  %v3752_v1 = vpop.eup %2543  ;;  %v1610_v42 = vadd.f32 %v3681_v21, %v1386_v44  ;;  %v1401_v8 = vadd.f32 %v1337_v35, %v1109_v15  ;;  %v4485_v10 = vld [vmem:[#allocation25_spill] sm:$0xff]  ;;  %v4487_v16 = vld [vmem:[#allocation72_spill] sm:$0xff] }
 0x11c   : > { %v810_v46 = vadd.f32 %v746_v59, %v518_v41  ;;  %v1330_v43 = vmul.f32 %v4449_v22, %v3219_v31  ;;  %v3757_v47 = vpop.eup %2545  ;;  %2549 = vtanh.f32 %v1623_v39  ;;  %v1402_v5 = vadd.f32 %v1338_v11, %v1110_v4  ;;  %v3761_v58 = vpop.permute.xlu1 %1708  ;;  %v4477_v31 = vld [vmem:[#allocation38_spill] sm:$0xff]  ;;  %v4486_v41 = vld [vmem:[#allocation71_spill] sm:$0xff]  ;;  %v4488_v23 = vld [vmem:[#allocation24_spill] sm:$0xff] }
 0x11d   : > { %v1101_v49 = vadd.f32 %v1037_v0, %v809_v33  ;;  %2551 = vtanh.f32 %v1624_v24  ;;  %v1625_v18 = vadd.f32 %v1561_v61, %v1401_v8  ;;  %v3765_v22 = vmul.f32 %v4477_v31, %v3737_v12  ;;  %v4482_v24 = vld [vmem:[#allocation75_spill] sm:$0xff]  ;;  %v4489_v59 = vld [vmem:[#allocation13_spill] sm:$0xff] }
 0x11e   : > { %v1102_v2 = vadd.f32 %v1038_v63, %v810_v46  ;;  %2553 = vtanh.f32 %v1609_v60  ;;  %v1626_v29 = vadd.f32 %v1561_v61, %v1402_v5  ;;  %v3770_v26 = vmul.f32 %v4478_v52, %v3737_v12  ;;  %v4479_v61 = vld [vmem:[#allocation65_spill] sm:$0xff]  ;;  %v4490_v63 = vld [vmem:[#allocation14_spill] sm:$0xff]  ;;  %v4491_v4 = vld [vmem:[#allocation47_spill] sm:$0xff] }
 0x11f   : > { %v1393_v13 = vadd.f32 %v1329_v48, %v1101_v49  ;;  %v2548_v14 = vpop.eup %2547  ;;  %2555 = vtanh.f32 %v1610_v42  ;;  %v3774_v38 = vmul.f32 %v4479_v61, %v3747_v7  ;;  %v3778_v37 = vmul.f32 %v4480_v27, %v3747_v7  ;;  %v4492_v48 = vld [vmem:[#allocation49_spill] sm:$0xff]  ;;  %v4493_v8 = vld [vmem:[#allocation11_spill] sm:$0xff]  ;;  %v4495_v49 = vld [vmem:[#allocation26_spill] sm:$0xff] }
 0x120   : > { %v1394_v21 = vadd.f32 %v1330_v43, %v1102_v2  ;;  %2557 = vtanh.f32 %v1625_v18  ;;  %v3783_v57 = vmul.f32 %v4481_v55, %v3759_v28  ;;  %v3787_v62 = vmul.f32 %v4482_v24, %v3759_v28  ;;  %v4494_v43 = vld [vmem:[#allocation12_spill] sm:$0xff]  ;;  %v4499_v61 = vld [vmem:[#allocation51_spill] sm:$0xff]  ;;  %v4500_v24 = vld [vmem:[#allocation69_spill] sm:$0xff] }
 0x121   : > { %v1617_v54 = vadd.f32 %v3705_v40, %v1393_v13  ;;  %2559 = vtanh.f32 %v1626_v29  ;;  %v3791_v35 = vmul.f32 %v4483_v51, %v3761_v58  ;;  %v3795_v50 = vmul.f32 %v4484_v25, %v3761_v58  ;;  %v4496_v29 = vld [vmem:[#allocation27_spill] sm:$0xff]  ;;  %v4501_v25 = vld [vmem:[#allocation73_spill] sm:$0xff] }
 0x122   : > { %v1618_v39 = vadd.f32 %v3705_v40, %v1394_v21  ;;  %v1719_v40 = vmul.f32 %v4485_v10, %v3737_v12  ;;  %v1720_v44 = vmul.f32 %v4486_v41, %v3737_v12  ;;  %v1721_v11 = vmul.f32 %v4487_v16, %v3747_v7  ;;  %v4497_v21 = vld [vmem:[#allocation18_spill] sm:$0xff]  ;;  %v4502_v41 = vld [vmem:[#allocation15_spill] sm:$0xff] }
 0x123   : > { %v1722_v15 = vmul.f32 %v4488_v23, %v3747_v7  ;;  %v3807_v0 = vmul.f32 %v4489_v59, %v3759_v28  ;;  %2561 = vtanh.f32 %v1617_v54  ;;  %v1724_v60 = vmul.f32 %v4490_v63, %v3759_v28  ;;  %v4498_v54 = vld [vmem:[#allocation19_spill] sm:$0xff]  ;;  %v4503_v59 = vld [vmem:[#allocation70_spill] sm:$0xff] }
 0x124   : > { %v3813_v33 = vmul.f32 %v4491_v4, %v3761_v58  ;;  %v3817_v42 = vmul.f32 %v4492_v48, %v3761_v58  ;;  %2563 = vtanh.f32 %v1618_v39  ;;  %v1727_v46 = vmul.f32 %v4493_v8, %v3737_v12  ;;  %v4504_v4 = vld [vmem:[#allocation43_spill] sm:$0xff]  ;;  %v4505_v8 = vld [vmem:[#allocation46_spill] sm:$0xff] }
 0x125   : > { %v1728_v5 = vmul.f32 %v4494_v43, %v3737_v12  ;;  %v1729_v18 = vmul.f32 %v4495_v49, %v3747_v7  ;;  %v1730_v13 = vmul.f32 %v4496_v29, %v3747_v7  ;;  %v1731_v31 = vmul.f32 %v4497_v21, %v3759_v28  ;;  %v4506_v21 = vld [vmem:[#allocation16_spill] sm:$0xff] }
 0x126   : > { %v3825_v2 = vpop.eup %2549  ;;  %v1732_v52 = vmul.f32 %v4498_v54, %v3759_v28  ;;  %v1733_v27 = vmul.f32 %v4499_v61, %v3761_v58  ;;  %v1734_v55 = vmul.f32 %v3601_v17, %v3761_v58  ;;  %v1735_v51 = vmul.f32 %v4500_v24, %v3737_v12  ;;  %v4507_v61 = vld [vmem:[#allocation17_spill] sm:$0xff] }
 0x127   : > { %v3835_v39 = vpop.eup %2551  ;;  %v1736_v10 = vmul.f32 %v4501_v25, %v3737_v12  ;;  %v1737_v16 = vmul.f32 %v4502_v41, %v3747_v7  ;;  %v1738_v63 = vmul.f32 %v4503_v59, %v3747_v7  ;;  %v1739_v48 = vmul.f32 %v4504_v4, %v3759_v28  ;;  %v4509_v25 = vld [vmem:[#allocation22_spill] sm:$0xff]  ;;  %v4511_v59 = vld [vmem:[#allocation23_spill] sm:$0xff] }
 0x128   : > { %v2554_v23 = vpop.eup %2553  ;;  %v1740_v43 = vmul.f32 %v4505_v8, %v3759_v28  ;;  %v1741_v17 = vmul.f32 %v3663_v30, %v3761_v58  ;;  %v1742_v29 = vmul.f32 %v3683_v34, %v3761_v58  ;;  %v3857_v54 = vmul.f32 %v4506_v21, %v3737_v12  ;;  %v4513_v30 = vld [vmem:[#allocation28_spill] sm:$0xff]  ;;  %v4515_v34 = vld [vmem:[#allocation50_spill] sm:$0xff] }
 0x129   : > { %v2556_v49 = vpop.eup %2555  ;;  %v3861_v24 = vmul.f32 %v4507_v61, %v3737_v12  ;;  %v3865_v41 = vmul.f32 %v4509_v25, %v3747_v7  ;;  %v3869_v4 = vmul.f32 %v4511_v59, %v3747_v7  ;;  %v3873_v8 = vmul.f32 %v4513_v30, %v3759_v28  ;;  %v4519_v59 = vld [vmem:[#allocation74_spill] sm:$0xff]  ;;  %v4520_v30 = vld [vmem:[#allocation29_spill] sm:$0xff] }
 0x12a   : > { %v3877_v21 = vmul.f32 %v4515_v34, %v3759_v28  ;;  %v3881_v61 = vmul.f32 %v3757_v47, %v3761_v58  ;;  %v3886_v25 = vmul.f32 %v2548_v14, %v3761_v58  ;;  %v4521_v34 = vld [vmem:[#allocation52_spill] sm:$0xff]  ;;  %v4522_v47 = vld [vmem:[#allocation53_spill] sm:$0xff]  ;;  %v3908_v14 = vmul.f32 %v3653_v6, %v3759_v28 }
 0x12b   : > { %4508 = vst [vmem:[#allocation56_spill] sm:$0xff] %v3861_v24  ;;  %4510 = vst [vmem:[#allocation57_spill] sm:$0xff] %v3865_v41  ;;  %v3883_v24 = vpop.eup %2557  ;;  %v3930_v6 = vmul.f32 %v3603_v3, %v3747_v7  ;;  %v1775_v3 = vadd.f32 %v3774_v38, %v3765_v22 }
 0x12c   : > { %4512 = vst [vmem:[#allocation58_spill] sm:$0xff] %v3869_v4  ;;  %4514 = vst [vmem:[#allocation61_spill] sm:$0xff] %v3873_v8  ;;  %v3890_v4 = vmul.f32 %v4519_v59, %v3737_v12  ;;  %v3894_v8 = vmul.f32 %v4520_v30, %v3737_v12  ;;  %v3900_v41 = vpop.eup %2559  ;;  %v3912_v59 = vmul.f32 %v3659_v20, %v3759_v28 }
 0x12d   : > { %4516 = vst [vmem:[#allocation62_spill] sm:$0xff] %v3877_v21  ;;  %4517 = vst [vmem:[#allocation63_spill] sm:$0xff] %v3881_v61  ;;  %v3898_v21 = vmul.f32 %v4521_v34, %v3747_v7  ;;  %v3904_v61 = vmul.f32 %v4522_v47, %v3747_v7  ;;  %v3915_v30 = vmul.f32 %v2554_v23, %v3761_v58  ;;  %v2562_v20 = vpop.eup %2561 }
 0x12e   : > { %4518 = vst [vmem:[#allocation31_spill] sm:$0xff] %v3886_v25  ;;  %4524 = vst [vmem:[#allocation33_spill] sm:$0xff] %v3908_v14  ;;  %v3918_v34 = vmul.f32 %v2556_v49, %v3761_v58  ;;  %v3922_v25 = vmul.f32 %v3623_v36, %v3737_v12  ;;  %v3926_v47 = vmul.f32 %v3643_v9, %v3737_v12 }
 0x12f   : > { %4523 = vst [vmem:[#allocation32_spill] sm:$0xff] %v3904_v61  ;;  %4525 = vst [vmem:[#allocation36_spill] sm:$0xff] %v3912_v59  ;;  %v4531_v59 = vld [vmem:[#allocation30_spill] sm:$0xff]  ;;  %v3938_v49 = vmul.f32 %v3739_v45, %v3759_v28  ;;  %v3942_v36 = vmul.f32 %v3752_v1, %v3759_v28  ;;  %v3946_v9 = vmul.f32 %v3721_v53, %v3737_v12 }
 0x130   : > { %4526 = vst [vmem:[#allocation34_spill] sm:$0xff] %v3915_v30  ;;  %4527 = vst [vmem:[#allocation59_spill] sm:$0xff] %v3918_v34  ;;  %v3934_v23 = vmul.f32 %v4531_v59, %v3747_v7  ;;  %v2564_v34 = vpop.eup %2563  ;;  %v1784_v59 = vadd.f32 %v3778_v37, %v3770_v26  ;;  %v1793_v30 = vadd.f32 %v1721_v11, %v1719_v40 }
 0x131   : > { %4528 = vst [vmem:[#allocation60_spill] sm:$0xff] %v3922_v25  ;;  %4529 = vst [vmem:[#allocation37_spill] sm:$0xff] %v3926_v47  ;;  %v1802_v14 = vadd.f32 %v1722_v15, %v1720_v44  ;;  %v1820_v45 = vadd.f32 %v1730_v13, %v1728_v5  ;;  %v1838_v47 = vadd.f32 %v1738_v63, %v1736_v10 }
 0x132   : > { %4530 = vst [vmem:[#allocation64_spill] sm:$0xff] %v3930_v6  ;;  %4532 = vst [vmem:[#allocation66_spill] sm:$0xff] %v3934_v23  ;;  %v1811_v23 = vadd.f32 %v1729_v18, %v1727_v46  ;;  %v1776_v1 = vadd.f32 %v1775_v3, %v3783_v57  ;;  %v1794_v53 = vadd.f32 %v1793_v30, %v3807_v0 }
 0x133   : > { %4533 = vst [vmem:[#allocation67_spill] sm:$0xff] %v3938_v49  ;;  %4534 = vst [vmem:[#allocation68_spill] sm:$0xff] %v3942_v36  ;;  %v1829_v49 = vadd.f32 %v1737_v16, %v1735_v51  ;;  %v1785_v36 = vadd.f32 %v1784_v59, %v3787_v62  ;;  %v1821_v25 = vadd.f32 %v1820_v45, %v1732_v52 }
 0x134   : > { %4535 = vst [vmem:[#allocation39_spill] sm:$0xff] %v3946_v9  ;;  %v1803_v9 = vadd.f32 %v1802_v14, %v1724_v60  ;;  %v1812_v6 = vadd.f32 %v1811_v23, %v1731_v31  ;;  %v1839_v22 = vadd.f32 %v1838_v47, %v1740_v43  ;;  %v1777_v38 = vadd.f32 %v1776_v1, %v3791_v35 }
 0x135   : > { %v1830_v61 = vadd.f32 %v1829_v49, %v1739_v48  ;;  %v1786_v26 = vadd.f32 %v1785_v36, %v3795_v50  ;;  %v1795_v37 = vadd.f32 %v1794_v53, %v3813_v33  ;;  %v1822_v11 = vadd.f32 %v1821_v25, %v1734_v55 }
 0x136   : > { %v1804_v40 = vadd.f32 %v1803_v9, %v3817_v42  ;;  %v1813_v44 = vadd.f32 %v1812_v6, %v1733_v27  ;;  %v1840_v15 = vadd.f32 %v1839_v22, %v1742_v29  ;;  %v1778_v62 = vrot.slane %v1777_v38, 4 }
 0x137   : > { %v1831_v57 = vadd.f32 %v1830_v61, %v1741_v17  ;;  %v1787_v46 = vrot.slane %v1786_v26, 4  ;;  %v1796_v0 = vrot.slane %v1795_v37, 4  ;;  %v1823_v18 = vrot.slane %v1822_v11, 4 }
 0x138   : > { %v1805_v60 = vrot.slane %v1804_v40, 4  ;;  %v1814_v5 = vrot.slane %v1813_v44, 4  ;;  %v1841_v31 = vrot.slane %v1840_v15, 4  ;;  %v1779_v52 = vadd.f32 %v1778_v62, %v1777_v38 }
 0x139   : > { %v1832_v13 = vrot.slane %v1831_v57, 4  ;;  %v1788_v35 = vadd.f32 %v1787_v46, %v1786_v26  ;;  %v1797_v51 = vadd.f32 %v1796_v0, %v1795_v37  ;;  %v1824_v33 = vadd.f32 %v1823_v18, %v1822_v11  ;;  %v4539_v37 = vld [vmem:[#allocation32_spill] sm:$0xff]  ;;  %v4543_v62 = vld [vmem:[#allocation66_spill] sm:$0xff]  ;;  %v4545_v18 = vld [vmem:[#allocation61_spill] sm:$0xff] }
 0x13a   : > { %v1806_v50 = vadd.f32 %v1805_v60, %v1804_v40  ;;  %v1815_v10 = vadd.f32 %v1814_v5, %v1813_v44  ;;  %v1842_v42 = vadd.f32 %v1841_v31, %v1840_v15  ;;  %v1780_v27 = vrot.slane %v1779_v52, 2  ;;  %v4540_v44 = vld [vmem:[#allocation60_spill] sm:$0xff]  ;;  %v4542_v15 = vld [vmem:[#allocation37_spill] sm:$0xff] }
 0x13b   : > { %v1833_v16 = vadd.f32 %v1832_v13, %v1831_v57  ;;  %v1789_v55 = vrot.slane %v1788_v35, 2  ;;  %v1798_v63 = vrot.slane %v1797_v51, 2  ;;  %v1768_v43 = vmul.f32 %v3727_v19, %v3737_v12  ;;  %v4541_v11 = vld [vmem:[#allocation64_spill] sm:$0xff]  ;;  %v4544_v0 = vld [vmem:[#allocation39_spill] sm:$0xff]  ;;  %v4546_v13 = vld [vmem:[#allocation62_spill] sm:$0xff] }
 0x13c   : > { %v1807_v48 = vrot.slane %v1806_v50, 2  ;;  %v1816_v17 = vrot.slane %v1815_v10, 2  ;;  %v1825_v29 = vrot.slane %v1824_v33, 2  ;;  %v3961_v25 = vadd.f32 %v1780_v27, %v1779_v52  ;;  %v4547_v52 = vld [vmem:[#allocation33_spill] sm:$0xff] }
 0x13d   : > { %v1834_v61 = vrot.slane %v1833_v16, 2  ;;  %v3963_v14 = vadd.f32 %v1789_v55, %v1788_v35  ;;  %v3965_v30 = vadd.f32 %v1798_v63, %v1797_v51  ;;  %v1843_v47 = vrot.slane %v1842_v42, 2  ;;  %v4548_v51 = vld [vmem:[#allocation36_spill] sm:$0xff]  ;;  %v4552_v55 = vld [vmem:[#allocation31_spill] sm:$0xff] }
 0x13e   : > { %v3967_v6 = vadd.f32 %v1807_v48, %v1806_v50  ;;  %v3969_v23 = vadd.f32 %v1816_v17, %v1815_v10  ;;  %v3971_v49 = vadd.f32 %v1825_v29, %v1824_v33  ;;  %v1765_v19 = vmul.f32 %v2562_v20, %v3761_v58  ;;  %v4553_v48 = vld [vmem:[#allocation34_spill] sm:$0xff]  ;;  %v4554_v17 = vld [vmem:[#allocation59_spill] sm:$0xff] }
 0x13f   : > { %v3973_v36 = vadd.f32 %v1834_v61, %v1833_v16  ;;  %v1769_v12 = vmul.f32 %v3685_v56, %v3747_v7  ;;  %v1770_v9 = vmul.f32 %v3701_v32, %v3747_v7  ;;  %v1771_v3 = vmul.f32 %v3825_v2, %v3759_v28 }
 0x140   : > { %v1766_v59 = vmul.f32 %v2564_v34, %v3761_v58  ;;  %v1772_v45 = vmul.f32 %v3835_v39, %v3759_v28  ;;  %v1773_v1 = vmul.f32 %v3883_v24, %v3761_v58  ;;  %v1774_v20 = vmul.f32 %v3900_v41, %v3761_v58  ;;  %v4536_v24 = vld [vmem:[#allocation57_spill] sm:$0xff]  ;;  %v4537_v58 = vld [vmem:[#allocation56_spill] sm:$0xff]  ;;  %v4538_v41 = vld [vmem:[#allocation58_spill] sm:$0xff] }
 0x141   : > { %v1782_v53 = vrot.slane %v3961_v25, 1  ;;  %v1791_v56 = vrot.slane %v3963_v14, 1  ;;  %v1800_v32 = vrot.slane %v3965_v30, 1  ;;  %v3992_v7 = vadd.f32 %v1843_v47, %v1842_v42  ;;  %v4551_v42 = vld [vmem:[#allocation63_spill] sm:$0xff] }
 0x142   : > { %v1809_v2 = vrot.slane %v3967_v6, 1  ;;  %v1818_v34 = vrot.slane %v3969_v23, 1  ;;  %v1827_v28 = vrot.slane %v3971_v49, 1  ;;  %v1836_v39 = vrot.slane %v3973_v36, 1 }
 0x143   : > { %v1847_v22 = vadd.f32 %v4536_v24, %v3857_v54  ;;  %v1856_v38 = vadd.f32 %v4538_v41, %v4537_v58  ;;  %v1865_v26 = vadd.f32 %v3898_v21, %v3890_v4  ;;  %v1874_v40 = vadd.f32 %v4539_v37, %v3894_v8  ;;  %v4549_v21 = vld [vmem:[#allocation67_spill] sm:$0xff]  ;;  %v4550_v8 = vld [vmem:[#allocation68_spill] sm:$0xff] }
 0x144   : > { %v1883_v57 = vadd.f32 %v4541_v11, %v4540_v44  ;;  %v1892_v46 = vadd.f32 %v4543_v62, %v4542_v15  ;;  %v1901_v60 = vadd.f32 %v1769_v12, %v4544_v0  ;;  %v1910_v5 = vadd.f32 %v1770_v9, %v1768_v43 }
 0x145   : > { %v1848_v54 = vadd.f32 %v1847_v22, %v4545_v18  ;;  %v1857_v31 = vadd.f32 %v1856_v38, %v4546_v13  ;;  %v1866_v35 = vadd.f32 %v1865_v26, %v4547_v52  ;;  %v1875_v4 = vadd.f32 %v1874_v40, %v4548_v51 }
 0x146   : > { %v1884_v50 = vadd.f32 %v1883_v57, %v4549_v21  ;;  %v1893_v10 = vadd.f32 %v1892_v46, %v4550_v8  ;;  %v1902_v33 = vadd.f32 %v1901_v60, %v1771_v3  ;;  %v1911_v16 = vadd.f32 %v1910_v5, %v1772_v45 }
 0x147   : > { %v1849_v27 = vadd.f32 %v1848_v54, %v4551_v42  ;;  %v1858_v63 = vadd.f32 %v1857_v31, %v4552_v55  ;;  %v1867_v43 = vadd.f32 %v1866_v35, %v4553_v48  ;;  %v1876_v29 = vadd.f32 %v1875_v4, %v4554_v17 }
 0x148   : > { %v1885_v61 = vadd.f32 %v1884_v50, %v1765_v19  ;;  %v1894_v47 = vadd.f32 %v1893_v10, %v1766_v59  ;;  %v1903_v12 = vadd.f32 %v1902_v33, %v1773_v1  ;;  %v1912_v9 = vadd.f32 %v1911_v16, %v1774_v20 }
 0x149   : > { %v1850_v24 = vrot.slane %v1849_v27, 4  ;;  %v1859_v22 = vrot.slane %v1858_v63, 4  ;;  %v1868_v58 = vrot.slane %v1867_v43, 4  ;;  %v1877_v41 = vrot.slane %v1876_v29, 4 }
 0x14a   : > { %v1886_v38 = vrot.slane %v1885_v61, 4  ;;  %v1895_v26 = vrot.slane %v1894_v47, 4  ;;  %v1904_v3 = vrot.slane %v1903_v12, 4  ;;  %v1913_v45 = vrot.slane %v1912_v9, 4 }
 0x14b   : > { %v1851_v37 = vadd.f32 %v1850_v24, %v1849_v27  ;;  %v1860_v40 = vadd.f32 %v1859_v22, %v1858_v63  ;;  %v1869_v44 = vadd.f32 %v1868_v58, %v1867_v43  ;;  %v1878_v11 = vadd.f32 %v1877_v41, %v1876_v29 }
 0x14c   : > { %v1887_v57 = vadd.f32 %v1886_v38, %v1885_v61  ;;  %v1896_v15 = vadd.f32 %v1895_v26, %v1894_v47  ;;  %v1905_v62 = vadd.f32 %v1904_v3, %v1903_v12  ;;  %v1914_v46 = vadd.f32 %v1913_v45, %v1912_v9 }
 0x14d   : > { %v1852_v19 = vrot.slane %v1851_v37, 2  ;;  %v1861_v59 = vrot.slane %v1860_v40, 2  ;;  %v1870_v1 = vrot.slane %v1869_v44, 2  ;;  %v1879_v20 = vrot.slane %v1878_v11, 2 }
 0x14e   : > { %v1888_v0 = vrot.slane %v1887_v57, 2  ;;  %v1897_v60 = vrot.slane %v1896_v15, 2  ;;  %v1906_v5 = vrot.slane %v1905_v62, 2  ;;  %v1915_v18 = vrot.slane %v1914_v46, 2 }
 0x14f   : > { %v1845_v54 = vrot.slane %v3992_v7, 1  ;;  %v1853_v13 = vadd.f32 %v1852_v19, %v1851_v37  ;;  %v1862_v31 = vadd.f32 %v1861_v59, %v1860_v40  ;;  %v1871_v52 = vadd.f32 %v1870_v1, %v1869_v44 }
 0x150   : > { %v1880_v35 = vadd.f32 %v1879_v20, %v1878_v11  ;;  %v1889_v51 = vadd.f32 %v1888_v0, %v1887_v57  ;;  %v1898_v4 = vadd.f32 %v1897_v60, %v1896_v15  ;;  %v1907_v21 = vadd.f32 %v1906_v5, %v1905_v62 }
 0x151   : > { %v1783_v50 = vadd.f32 %v1782_v53, %v3961_v25  ;;  %v4028_v8 = vadd.f32 %v1791_v56, %v3963_v14  ;;  %v1801_v10 = vadd.f32 %v1800_v32, %v3965_v30  ;;  %v1916_v33 = vadd.f32 %v1915_v18, %v1914_v46 }
 0x152   : > { %v1810_v16 = vadd.f32 %v1809_v2, %v3967_v6  ;;  %v1819_v42 = vadd.f32 %v1818_v34, %v3969_v23  ;;  %v1854_v27 = vrot.slane %v1853_v13, 1  ;;  %v1863_v25 = vrot.slane %v1862_v31, 1 }
 0x153   : > { %v1828_v14 = vadd.f32 %v1827_v28, %v3971_v49  ;;  %v1837_v53 = vadd.f32 %v1836_v39, %v3973_v36  ;;  %v1846_v30 = vadd.f32 %v1845_v54, %v3992_v7  ;;  %v1872_v56 = vrot.slane %v1871_v52, 1 }
 0x154   : > { %v1881_v32 = vrot.slane %v1880_v35, 1  ;;  %v1890_v55 = vrot.slane %v1889_v51, 1  ;;  %v1899_v6 = vrot.slane %v1898_v4, 1  ;;  %v1908_v2 = vrot.slane %v1907_v21, 1 }
 0x155   : > { %v1917_v63 = vrot.slane %v1916_v33, 1  ;;  %v1855_v23 = vadd.f32 %v1854_v27, %v1853_v13  ;;  %v1864_v34 = vadd.f32 %v1863_v25, %v1862_v31  ;;  %v1936_v48 = vsel %vm1935_vm0, %v1801_v10, %v1783_v50 }
 0x156   : > { %v1873_v49 = vadd.f32 %v1872_v56, %v1871_v52  ;;  %v1938_v28 = vsel %vm1937_vm1, %v1819_v42, %v1936_v48  ;;  %v1949_v36 = vsel %vm1935_vm0, %v1810_v16, %v4028_v8  ;;  %v1882_v7 = vadd.f32 %v1881_v32, %v1880_v35  ;;  %v2599_v32 = vld [vmem:[%s2745_s8] sm:$0xff] }
 0x157   : > { %v1940_v39 = vsel %vm1939_vm2, %v1837_v53, %v1938_v28  ;;  %v1950_v43 = vsel %vm1937_vm1, %v1828_v14, %v1949_v36  ;;  %v1891_v17 = vadd.f32 %v1890_v55, %v1889_v51  ;;  %v1900_v47 = vadd.f32 %v1899_v6, %v1898_v4  ;;  %v2602_v36 = vld [vmem:[%s2745_s8 + $0x10] sm:$0xff] }
 0x158   : > { %v1942_v29 = vsel %vm1941_vm3, %v1855_v23, %v1940_v39  ;;  %v1951_v61 = vsel %vm1939_vm2, %v1846_v30, %v1950_v43  ;;  %v1909_v12 = vadd.f32 %v1908_v2, %v1907_v21  ;;  %v1918_v22 = vadd.f32 %v1917_v63, %v1916_v33  ;;  %v2600_v2 = vld [vmem:[%s2745_s8 + $0x8] sm:$0xff] }
 0x159   : > { %v1944_v9 = vsel %vm1943_vm4, %v1873_v49, %v1942_v29  ;;  %v1952_v24 = vsel %vm1941_vm3, %v1864_v34, %v1951_v61  ;;  %v2138_v55 = vcombine.high %v2599_v32, %v2599_v32  ;;  %v2139_v63 = vcombine.high %v2600_v2, %v2600_v2  ;;  %v4555_v43 = vld [vmem:[#allocation3_spill] sm:$0xff] }
 0x15a   : > { %v1946_v58 = vsel %vm1945_vm5, %v1891_v17, %v1944_v9  ;;  %v1953_v41 = vsel %vm1943_vm4, %v1882_v7, %v1952_v24  ;;  %v4072_v61 = vld [vmem:[%s2745_s8 + $0x28] sm:$0xff]  ;;  %v4078_v24 = vld [vmem:[%s2745_s8 + $0x20] sm:$0xff] }
 0x15b   : > { %v1948_v38 = vsel %vm1947_vm6, %v1909_v12, %v1946_v58  ;;  %v1954_v26 = vsel %vm1945_vm5, %v1900_v47, %v1953_v41  ;;  %v4083_v58 = vld [vmem:[%s2745_s8 + $0x38] sm:$0xff] }
 0x15c   : > { %v1955_v3 = vsel %vm1947_vm6, %v1918_v22, %v1954_v26  ;;  %v2145_v41 = vcombine.high %v4083_v58, %v4083_v58 }
 0x15d   : > { %v1958_v45 = vmax.f32 %v1948_v38, %v1955_v3 }
 0x15f   : > { %1959 = vmax.xlane.f32.xlu0 %v1958_v45  ;;  %v4088_v45 = vld [vmem:[%s2745_s8 + $0x30] sm:$0xff] }
 0x1ec   : > { %v1960_v37 = vpop.xlane.xlu0 %1959 }
 0x1ed   : > { %v1963_v40 = vrot.slane %v1960_v37, 2  ;;  %v1964_v44 = vrot.slane %v1960_v37, 3  ;;  %v1965_v11 = vrot.slane %v1960_v37, 4  ;;  %v1977_v57 = vsub.f32 %v1783_v50, %v1960_v37 }
 0x1ee   : > { %v1978_v15 = vsub.f32 %v4028_v8, %v1960_v37  ;;  %v1962_v62 = vrot.slane %v1960_v37, 1  ;;  %v1966_v46 = vrot.slane %v1960_v37, 5  ;;  %v1967_v52 = vrot.slane %v1960_v37, 6 }
 0x1ef   : > { %v1981_v19 = vsub.f32 %v1819_v42, %v1963_v40  ;;  %v1982_v59 = vsub.f32 %v1828_v14, %v1963_v40  ;;  %v1983_v1 = vsub.f32 %v1837_v53, %v1964_v44  ;;  %v1993_v20 = vmul.f32 1.442695, %v1977_v57 }
 0x1f0   : > { %v1979_v0 = vsub.f32 %v1801_v10, %v1962_v62  ;;  %v1980_v60 = vsub.f32 %v1810_v16, %v1962_v62  ;;  %v1984_v5 = vsub.f32 %v1846_v30, %v1964_v44  ;;  %v1995_v13 = vmul.f32 1.442695, %v1978_v15 }
 0x1f1   : > { %v2001_v18 = vmul.f32 1.442695, %v1981_v19  ;;  %v2003_v54 = vmul.f32 1.442695, %v1982_v59  ;;  %2565 = vpow2.f32 %v1993_v20  ;;  %v1985_v35 = vsub.f32 %v1855_v23, %v1965_v11 }
 0x1f2   : > { %v1997_v31 = vmul.f32 1.442695, %v1979_v0  ;;  %v1999_v51 = vmul.f32 1.442695, %v1980_v60  ;;  %v1986_v4 = vsub.f32 %v1864_v34, %v1965_v11  ;;  %v2005_v21 = vmul.f32 1.442695, %v1983_v1 }
 0x1f3   : > { %2567 = vpow2.f32 %v2001_v18  ;;  %v1968_v50 = vrot.slane %v1960_v37, 7  ;;  %v1987_v8 = vsub.f32 %v1873_v49, %v1966_v46  ;;  %v2007_v33 = vmul.f32 1.442695, %v1984_v5  ;;  %v4065_v49 = vld [vmem:[%s2745_s8 + $0x18] sm:$0xff] }
 0x1f4   : > { %2569 = vpow2.f32 %v2003_v54  ;;  %v1988_v10 = vsub.f32 %v1882_v7, %v1966_v46  ;;  %v1989_v16 = vsub.f32 %v1891_v17, %v1967_v52  ;;  %v2009_v42 = vmul.f32 1.442695, %v1985_v35 }
 0x1f5   : > { %2571 = vpow2.f32 %v1995_v13  ;;  %v1990_v27 = vsub.f32 %v1900_v47, %v1967_v52  ;;  %v2011_v25 = vmul.f32 1.442695, %v1986_v4  ;;  %v1991_v14 = vsub.f32 %v1909_v12, %v1968_v50 }
 0x1f6   : > { %2573 = vpow2.f32 %v1997_v31  ;;  %v2013_v53 = vmul.f32 1.442695, %v1987_v8  ;;  %v1992_v30 = vsub.f32 %v1918_v22, %v1968_v50  ;;  %v2015_v56 = vmul.f32 1.442695, %v1988_v10 }
 0x1f7   : > { %2575 = vpow2.f32 %v1999_v51  ;;  %v2017_v6 = vmul.f32 1.442695, %v1989_v16  ;;  %v2019_v23 = vmul.f32 1.442695, %v1990_v27  ;;  %v2021_v48 = vmul.f32 1.442695, %v1991_v14 }
 0x1f8   : > { %2577 = vpow2.f32 %v2005_v21  ;;  %v2141_v28 = vcombine.high %v4065_v49, %v4065_v49  ;;  %v2140_v7 = vcombine.high %v2602_v36, %v2602_v36  ;;  %v2023_v29 = vmul.f32 1.442695, %v1992_v30 }
 0x1f9   : > { %2579 = vpow2.f32 %v2007_v33  ;;  %v2143_v47 = vcombine.high %v4072_v61, %v4072_v61  ;;  %v2142_v22 = vcombine.high %v4078_v24, %v4078_v24  ;;  %v2144_v37 = vcombine.high %v4088_v45, %v4088_v45 }
 0x1fa   : > { %2581 = vpow2.f32 %v2009_v42 }
 0x1fb   : > { %2583 = vpow2.f32 %v2011_v25  ;;  %v2566_v34 = vpop.eup %2565 }
 0x1fc   : > { %2585 = vpow2.f32 %v2013_v53  ;;  %v2077_v17 = vrot.slane %v2566_v34, %v4555_v43 }
 0x1fd   : > { %v2568_v39 = vpop.eup %2567  ;;  %2587 = vpow2.f32 %v2015_v56 }
 0x1fe   : > { %v2570_v12 = vpop.eup %2569  ;;  %2589 = vpow2.f32 %v2017_v6  ;;  %v2093_v9 = vrot.slane %v2568_v39, %v4555_v43  ;;  %v2154_v26 = vmul.f32 %v2599_v32, %v2077_v17  ;;  %v2043_v3 = vrot.slane %v2568_v39, 6 }
 0x1ff   : > { %v2572_v38 = vpop.eup %2571  ;;  %2591 = vpow2.f32 %v2019_v23  ;;  %v2057_v11 = vrot.slane %v2570_v12, 6  ;;  %v2097_v57 = vrot.slane %v2570_v12, %v4555_v43 }
 0x200   : > { %v2574_v40 = vpop.eup %2573  ;;  %v2081_v44 = vrot.slane %v2572_v38, %v4555_v43  ;;  %2593 = vpow2.f32 %v2021_v48  ;;  %v2158_v19 = vmul.f32 %v2602_v36, %v2093_v9  ;;  %v2171_v20 = vsel %vm2170_vm7, %v2154_v26, 0.0 }
 0x201   : > { %v2576_v15 = vpop.eup %2575  ;;  %v2085_v62 = vrot.slane %v2574_v40, %v4555_v43  ;;  %2595 = vpow2.f32 %v2023_v29  ;;  %v2041_v46 = vrot.slane %v2574_v40, 7  ;;  %v2159_v53 = vmul.f32 %v2140_v7, %v2097_v57 }
 0x202   : > { %v2578_v59 = vpop.eup %2577  ;;  %v2155_v1 = vmul.f32 %v2138_v55, %v2081_v44  ;;  %v2089_v0 = vrot.slane %v2576_v15, %v4555_v43  ;;  %v2055_v60 = vrot.slane %v2576_v15, 7 }
 0x203   : > { %v2580_v5 = vpop.eup %2579  ;;  %v2156_v18 = vmul.f32 %v2600_v2, %v2085_v62  ;;  %v2042_v54 = vsel %vm1935_vm0, %v2041_v46, %v2566_v34  ;;  %v2045_v13 = vrot.slane %v2578_v59, 5  ;;  %v2101_v31 = vrot.slane %v2578_v59, %v4555_v43 }
 0x204   : > { %v2582_v52 = vpop.eup %2581  ;;  %v2172_v35 = vsel %vm2170_vm7, %v2155_v1, 0.0  ;;  %v2157_v51 = vmul.f32 %v2139_v63, %v2089_v0  ;;  %v2044_v4 = vsel %vm1937_vm1, %v2043_v3, %v2042_v54  ;;  %v2056_v21 = vsel %vm1935_vm0, %v2055_v60, %v2572_v38 }
 0x205   : > { %v2584_v50 = vpop.eup %2583  ;;  %v2173_v8 = vadd.f32 %v2172_v35, %v2171_v20  ;;  %v2176_v33 = vsel %vm2170_vm7, %v2156_v18, 0.0  ;;  %v2046_v10 = vsel %vm1939_vm2, %v2045_v13, %v2044_v4  ;;  %v2047_v16 = vrot.slane %v2582_v52, 4 }
 0x206   : > { %v2586_v42 = vpop.eup %2585  ;;  %v2177_v27 = vsel %vm2170_vm7, %v2157_v51, 0.0  ;;  %v2058_v25 = vsel %vm1937_vm1, %v2057_v11, %v2056_v21  ;;  %v2059_v14 = vrot.slane %v2580_v5, 5  ;;  %v2061_v55 = vrot.slane %v2584_v50, 4 }
 0x207   : > { %v2588_v30 = vpop.eup %2587  ;;  %2174 = vadd.xlane.f32.xlu0 %v2173_v8  ;;  %v2048_v56 = vsel %vm1941_vm3, %v2047_v16, %v2046_v10  ;;  %v2049_v32 = vrot.slane %v2586_v42, 3  ;;  %v2105_v6 = vrot.slane %v2580_v5, %v4555_v43  ;;  %v2178_v63 = vadd.f32 %v2177_v27, %v2176_v33 }
 0x208   : > { %v2590_v2 = vpop.eup %2589  ;;  %v2060_v23 = vsel %vm1939_vm2, %v2059_v14, %v2058_v25  ;;  %v2063_v34 = vrot.slane %v2588_v30, 3  ;;  %v2160_v48 = vmul.f32 %v4065_v49, %v2101_v31  ;;  %v2181_v3 = vsel %vm2170_vm7, %v2158_v19, 0.0 }
 0x209   : > { %v2592_v36 = vpop.eup %2591  ;;  %v2050_v39 = vsel %vm1943_vm4, %v2049_v32, %v2048_v56  ;;  %v2051_v17 = vrot.slane %v2590_v2, 2  ;;  %v2062_v7 = vsel %vm1941_vm3, %v2061_v55, %v2060_v23  ;;  %v2161_v29 = vmul.f32 %v2141_v28, %v2105_v6  ;;  %v4556_v6 = vld [vmem:[#allocation5_spill] sm:$0xff] }
 0x20a   : > { %v2594_v12 = vpop.eup %2593  ;;  %v2064_v9 = vsel %vm1943_vm4, %v2063_v34, %v2062_v7  ;;  %v2065_v38 = vrot.slane %v2592_v36, 2  ;;  %v2186_v26 = vsel %vm2170_vm7, %v2160_v48, 0.0  ;;  %v2182_v15 = vsel %vm2170_vm7, %v2159_v53, 0.0  ;;  %v4558_v34 = vld [vmem:[#allocation4_spill] sm:$0xff]  ;;  %v4559_v7 = vld [vmem:[#allocation9_spill] sm:$0xff] }
 0x20b   : > { %v2596_v40 = vpop.eup %2595  ;;  %2179 = vadd.xlane.f32.xlu0 %v2178_v63  ;;  %v2052_v44 = vsel %vm1945_vm5, %v2051_v17, %v2050_v39  ;;  %v2053_v11 = vrot.slane %v2594_v12, 1  ;;  %v2187_v57 = vsel %vm2170_vm7, %v2161_v29, 0.0  ;;  %v2117_v46 = vrot.slane %v2586_v42, %v4555_v43  ;;  %v4557_v63 = vld [vmem:[#allocation7_spill] sm:$0xff] }
 0x20c   : > { %v2066_v49 = vsel %vm1945_vm5, %v2065_v38, %v2064_v9  ;;  %v2067_v28 = vrot.slane %v2596_v40, 1  ;;  %v2188_v62 = vadd.f32 %v2187_v57, %v2186_v26  ;;  %v2121_v1 = vrot.slane %v2588_v30, %v4555_v43  ;;  %v4560_v38 = vld [vmem:[#allocation8_spill] sm:$0xff] }
 0x20d   : > { %v2054_v59 = vsel %vm1947_vm6, %v2053_v11, %v2052_v44  ;;  %v2109_v19 = vrot.slane %v2582_v52, %v4555_v43  ;;  %v2113_v20 = vrot.slane %v2584_v50, %v4555_v43  ;;  %v2164_v60 = vmul.f32 %v4072_v61, %v2117_v46 }
 0x20e   : > { %v2068_v0 = vsel %vm1947_vm6, %v2067_v28, %v2066_v49  ;;  %v2133_v5 = vrot.slane %v2594_v12, %v4555_v43  ;;  %v2137_v18 = vrot.slane %v2596_v40, %v4555_v43  ;;  %v2165_v13 = vmul.f32 %v2143_v47, %v2121_v1  ;;  %v4561_v40 = vld [vmem:[#allocation6_spill] sm:$0xff] }
 0x20f   : > { %v2071_v54 = vadd.f32 %v2068_v0, %v2054_v59  ;;  %2189 = vadd.xlane.f32.xlu0 %v2188_v62  ;;  %v2162_v31 = vmul.f32 %v4078_v24, %v2109_v19  ;;  %v2163_v52 = vmul.f32 %v2142_v22, %v2113_v20  ;;  %v2196_v35 = vsel %vm2170_vm7, %v2164_v60, 0.0  ;;  %v4562_v49 = vld [vmem:[#allocation10_spill] sm:$0xff] }
 0x210   : > { %v2168_v51 = vmul.f32 %v4083_v58, %v2133_v5  ;;  %v2169_v4 = vmul.f32 %v2145_v41, %v2137_v18  ;;  %v2125_v21 = vrot.slane %v2590_v2, %v4555_v43  ;;  %v2197_v61 = vsel %vm2170_vm7, %v2165_v13, 0.0  ;;  %v4564_v20 = vld [vmem:[#allocation2_spill] sm:$0xff] }
 0x211   : > { %2072 = vadd.xlane.f32.xlu1 %v2071_v54  ;;  %v2129_v47 = vrot.slane %v2592_v36, %v4555_v43  ;;  %v2198_v50 = vadd.f32 %v2197_v61, %v2196_v35  ;;  %v2183_v8 = vadd.f32 %v2182_v15, %v2181_v3  ;;  %v2191_v33 = vsel %vm2170_vm7, %v2162_v31, 0.0 }
 0x212   : > { %v2206_v24 = vsel %vm2170_vm7, %v2168_v51, 0.0  ;;  %v2207_v22 = vsel %vm2170_vm7, %v2169_v4, 0.0  ;;  %v2192_v10 = vsel %vm2170_vm7, %v2163_v52, 0.0  ;;  %v2166_v58 = vmul.f32 %v4088_v45, %v2125_v21 }
 0x213   : > { %2199 = vadd.xlane.f32.xlu0 %v2198_v50  ;;  %v2167_v41 = vmul.f32 %v2144_v37, %v2129_v47  ;;  %v2208_v16 = vadd.f32 %v2207_v22, %v2206_v24  ;;  %v2193_v42 = vadd.f32 %v2192_v10, %v2191_v33  ;;  %v4563_v59 = vlaneseq }
 0x214   : > { %v2201_v27 = vsel %vm2170_vm7, %v2166_v58, 0.0 }
 0x215   : > { %2184 = vadd.xlane.f32.xlu1 %v2183_v8  ;;  %v2202_v25 = vsel %vm2170_vm7, %v2167_v41, 0.0  ;;  %v2294_v1 = vand.u32 127, %v4563_v59 }
 0x216   : > { %v2203_v14 = vadd.f32 %v2202_v25, %v2201_v27 }
 0x217   : > { %2209 = vadd.xlane.f32.xlu0 %v2208_v16  ;;  %v2297_v0 = vsub.s32 %v2294_v1, %v4564_v20 }
 0x219   : > { %2194 = vadd.xlane.f32.xlu1 %v2193_v42 }
 0x21d   : > { %2204 = vadd.xlane.f32.xlu1 %v2203_v14 }
 0x294   : > { %v2175_v30 = vpop.xlane.xlu0 %2174 }
 0x298   : > { %v2180_v55 = vpop.xlane.xlu0 %2179 }
 0x29c   : > { %v2190_v17 = vpop.xlane.xlu0 %2189 }
 0x29e   : > { %v2073_v53 = vpop.xlane.xlu1 %2072 }
 0x29f   : > { %2597 = vrcp.f32 %v2073_v53 }
 0x2a0   : > { %v2200_v57 = vpop.xlane.xlu0 %2199 }
 0x2a2   : > { %v2185_v56 = vpop.xlane.xlu1 %2184 }
 0x2a4   : > { %v2210_v62 = vpop.xlane.xlu0 %2209 }
 0x2a6   : > { %v2195_v2 = vpop.xlane.xlu1 %2194 }
 0x2a9   : > { %v2598_v32 = vpop.eup %2597 }
 0x2aa   : > { %v2220_v45 = vrot.slane %v2598_v32, %v4556_v6  ;;  %v2216_v37 = vrot.slane %v2598_v32, %v4555_v43  ;;  %v2224_v23 = vrot.slane %v2598_v32, %v4557_v63  ;;  %v2232_v48 = vrot.slane %v2598_v32, %v4558_v34  ;;  %v2205_v3 = vpop.xlane.xlu1 %2204 }
 0x2ab   : > { %v2228_v29 = vrot.slane %v2598_v32, %v4559_v7  ;;  %v2240_v26 = vrot.slane %v2598_v32, %v4560_v38  ;;  %v2236_v44 = vrot.slane %v2598_v32, %v4561_v40  ;;  %v2244_v28 = vrot.slane %v2598_v32, %v4562_v49 }
 0x2ac   : > { %v2254_v36 = vmul.f32 %v2220_v45, %v2180_v55  ;;  %v2253_v39 = vmul.f32 %v2216_v37, %v2175_v30  ;;  %v2255_v12 = vmul.f32 %v2224_v23, %v2185_v56  ;;  %v2257_v9 = vmul.f32 %v2232_v48, %v2195_v2 }
 0x2ad   : > { %v2256_v43 = vmul.f32 %v2228_v29, %v2190_v17  ;;  %v2259_v11 = vmul.f32 %v2240_v26, %v2205_v3  ;;  %v2258_v15 = vmul.f32 %v2236_v44, %v2200_v57  ;;  %v2260_v46 = vmul.f32 %v2244_v28, %v2210_v62 }
 0x2ae   : > { %2273 = vperm.xlu0 %2427, %v2254_v36   ;;  %2270 = vperm.xlu1 %2428, %v2253_v39  }
 0x2b2   : > { %2276 = vperm.xlu1 %2428, %v2255_v12   ;;  %2282 = vperm.xlu0 %2427, %v2257_v9  }
 0x2b6   : > { %2279 = vperm.xlu1 %2428, %v2256_v43   ;;  %2288 = vperm.xlu0 %2427, %v2259_v11  }
 0x2ba   : > { %2285 = vperm.xlu1 %2428, %v2258_v15  }
 0x2be   : > { %2291 = vperm.xlu1 %2428, %v2260_v46  }
 0x32d   : > { %v2271_v19 = vpop.permute.xlu1 %2270  ;;  %v2274_v60 = vpop.permute.xlu0 %2273 }
 0x32e   : > { %v2302_v18 = vrot.slane %v2274_v60, %v2297_v0  ;;  %v2298_v54 = vrot.slane %v2271_v19, %v2297_v0 }
 0x330   : > { %v2327_v35 = vsel %vm1935_vm0, %v2302_v18, %v2298_v54 }
 0x331   : > { %v2277_v5 = vpop.permute.xlu1 %2276  ;;  %v2283_v31 = vpop.permute.xlu0 %2282 }
 0x332   : > { %v2306_v13 = vrot.slane %v2277_v5, %v2297_v0  ;;  %v2314_v61 = vrot.slane %v2283_v31, %v2297_v0 }
 0x334   : > { %v2328_v4 = vsel %vm1937_vm1, %v2306_v13, %v2327_v35 }
 0x335   : > { %v2280_v52 = vpop.permute.xlu1 %2279  ;;  %v2289_v50 = vpop.permute.xlu0 %2288 }
 0x336   : > { %v2310_v51 = vrot.slane %v2280_v52, %v2297_v0  ;;  %v2322_v33 = vrot.slane %v2289_v50, %v2297_v0 }
 0x338   : > { %v2329_v21 = vsel %vm1939_vm2, %v2310_v51, %v2328_v4 }
 0x339   : > { %v2286_v47 = vpop.permute.xlu1 %2285  ;;  %v2330_v24 = vsel %vm1941_vm3, %v2314_v61, %v2329_v21 }
 0x33a   : > { %v2318_v8 = vrot.slane %v2286_v47, %v2297_v0 }
 0x33c   : > { %v2331_v22 = vsel %vm1943_vm4, %v2318_v8, %v2330_v24 }
 0x33d   : > { %v2292_v10 = vpop.permute.xlu1 %2291  ;;  %v2332_v41 = vsel %vm1945_vm5, %v2322_v33, %v2331_v22 }
 0x33e   : > { %v2326_v58 = vrot.slane %v2292_v10, %v2297_v0 }
 0x340   : > { %v2333_v16 = vsel %vm1947_vm6, %v2326_v58, %v2332_v41 }
 0x341   : > { %2336 = vst.msk [vmem:[%s225_s21] sm:$0xff] %vm2335_vm8, %v2333_v16 }
 0x342 PF: > { %s14_s15 = sadd.s32 1, %s2613_s15  }
 0x343   : > { %p11_p5 = scmp.ge.s32.totalorder %s14_s15, 4  }
 0x345   :  { %13 = sbr.rel (!%p11_p5) target bundleno = 1 (0x1), region = 71 }

</bundles_post_ra>
